<compile_context>
chip_gen: v5e
topology: v5e:2x2
jax: 0.10.0
libtpu: 0.0.40
codegen_flags: <defaults>
</compile_context>

<pallas_src>
import jax
import jax.numpy as jnp
from jax.experimental import pallas as pl
from jax.experimental.pallas import tpu as pltpu


def _round_up(x, m):
    return (x + m - 1) // m * m


# ----------------------------- Pallas kernels ------------------------------ #

def _make_conv_kernel(tap_offsets, m_out):
    """Tap-accumulation conv+BN+ReLU kernel.

    x_ref:     (1, R, Cin)       bf16 flattened (phase-major) activations
    w_ref:     (T, Cin, Cpad)    bf16 per-tap weights, BN scale pre-folded
    shift_ref: (1, Cpad)         f32  BN shift
    o_ref:     (1, m_out, Cpad)  output (flat rows, padded channels)
    """
    def kernel(x_ref, w_ref, shift_ref, o_ref):
        off0 = tap_offsets[0]
        acc = jnp.dot(x_ref[0, off0:off0 + m_out, :], w_ref[0],
                      preferred_element_type=jnp.float32)
        for t in range(1, len(tap_offsets)):
            off = tap_offsets[t]
            acc = acc + jnp.dot(x_ref[0, off:off + m_out, :], w_ref[t],
                                preferred_element_type=jnp.float32)
        o_ref[0, :, :] = jnp.maximum(acc + shift_ref[...], 0.0).astype(o_ref.dtype)
    return kernel


def _maxpool_kernel(p00_ref, p01_ref, p10_ref, p11_ref, o_ref):
    # Polyphase inputs per image:
    #   p00: (1, OH+1, OW+1, C)  x[2i,   2j  ]
    #   p01: (1, OH+1, OW,   C)  x[2i,   2j+1]
    #   p10: (1, OH,   OW+1, C)  x[2i+1, 2j  ]
    #   p11: (1, OH,   OW,   C)  x[2i+1, 2j+1]
    # Separable 3x3 max: W-direction first (per row parity), then H-direction.
    _, OH, OW, _ = o_ref.shape
    p00 = p00_ref[...]
    p10 = p10_ref[...]
    cm0 = jnp.maximum(jnp.maximum(p00[:, :, 0:OW, :], p00[:, :, 1:OW + 1, :]),
                      p01_ref[...])                    # even rows, (1, OH+1, OW, C)
    cm1 = jnp.maximum(jnp.maximum(p10[:, :, 0:OW, :], p10[:, :, 1:OW + 1, :]),
                      p11_ref[...])                    # odd rows,  (1, OH,   OW, C)
    o_ref[...] = jnp.maximum(
        jnp.maximum(cm0[:, 0:OH, :, :], cm0[:, 1:OH + 1, :, :]), cm1)


# ------------------------------ wrappers ----------------------------------- #

def conv_bn_relu(x_nhwc, w, gamma, beta, mean, var, *, stride=1, padding=0,
                 eps=1e-5, out_dtype=None):
    """BasicConv2d: conv(bias=False) + BatchNorm2d(eval) + ReLU, NHWC in/out."""
    N, H, W, Cin = x_nhwc.shape
    Cout, _, KH, KW = w.shape
    OH = (H + 2 * padding - KH) // stride + 1
    OW = (W + 2 * padding - KW) // stride + 1
    out_dtype = x_nhwc.dtype if out_dtype is None else out_dtype

    # Fold BN (eval): scale into the weights; only shift + ReLU in the kernel.
    scale = gamma / jnp.sqrt(var + eps)
    shift = (beta - mean * scale).astype(jnp.float32)

    Cpad = _round_up(Cout, 128)
    w_taps = (jnp.transpose(w, (2, 3, 1, 0)).reshape(KH * KW, Cin, Cout)
              * scale[None, None, :])
    w_taps = jnp.pad(w_taps, ((0, 0), (0, 0), (0, Cpad - Cout))).astype(jnp.bfloat16)
    shift_p = jnp.pad(shift, (0, Cpad - Cout)).reshape(1, Cpad)

    xb = x_nhwc.astype(jnp.bfloat16)
    if stride == 1:
        # Shifted-flat layout: with row stride Wrow = W + 2*padding, output flat
        # position p = oh*Wrow + ow, and tap (kh, kw) reads rows p + kh*Wrow + kw.
        # Columns ow >= OW are garbage and sliced off after the kernel.
        Wrow = W + 2 * padding
        extra_h = 1 if KW > 1 else 0   # room for the kw shift of the last row
        xp = jnp.pad(xb, ((0, 0), (padding, padding + extra_h),
                          (padding, padding), (0, 0)))
        x_flat = xp.reshape(N, (H + 2 * padding + extra_h) * Wrow, Cin)
        tap_offsets = [kh * Wrow + kw for kh in range(KH) for kw in range(KW)]
    else:
        assert stride == 2 and padding == 0 and KH == 3 and KW == 3
        # Phase-major polyphase flat layout: x[2i+a, 2j+b] lives at flat row
        # (2a+b)*Hq*Wq + i*Wq + j, so every tap is a contiguous row window.
        Hq, Wq = OH + 1, OW + 1
        xp = jnp.pad(xb, ((0, 0), (0, max(0, 2 * Hq - H)),
                          (0, max(0, 2 * Wq - W)), (0, 0)))
        xp = xp[:, :2 * Hq, :2 * Wq, :]
        x_flat = xp.reshape(N, Hq, 2, Wq, 2, Cin).transpose(0, 2, 4, 1, 3, 5)
        x_flat = x_flat.reshape(N, 4 * Hq * Wq, Cin)
        Wrow = Wq
        tap_offsets = [((kh % 2) * 2 + (kw % 2)) * (Hq * Wq)
                       + (kh // 2) * Wq + (kw // 2)
                       for kh in range(3) for kw in range(3)]

    R = x_flat.shape[1]
    m_out = OH * Wrow
    T = KH * KW

    out = pl.pallas_call(
        _make_conv_kernel(tap_offsets, m_out),
        out_shape=jax.ShapeDtypeStruct((N, m_out, Cpad), out_dtype),
        grid=(N,),
        in_specs=[
            pl.BlockSpec((1, R, Cin), lambda n: (n, 0, 0)),
            pl.BlockSpec((T, Cin, Cpad), lambda n: (0, 0, 0)),   # resident weights
            pl.BlockSpec((1, Cpad), lambda n: (0, 0)),
        ],
        out_specs=pl.BlockSpec((1, m_out, Cpad), lambda n: (n, 0, 0)),
        compiler_params=pltpu.CompilerParams(
            dimension_semantics=("parallel",),
            vmem_limit_bytes=32 * 1024 * 1024),
    )(x_flat, w_taps, shift_p)

    return out.reshape(N, OH, Wrow, Cpad)[:, :, :OW, :Cout]


def maxpool3x3_s2(x_nhwc):
    """nn.MaxPool2d(kernel_size=3, stride=2), no padding, NHWC in/out."""
    N, H, W, C = x_nhwc.shape
    OH = (H - 3) // 2 + 1
    OW = (W - 3) // 2 + 1

    # Polyphase split (even/odd rows x even/odd cols): total bytes == |x|.
    p00 = x_nhwc[:, 0::2, 0::2, :][:, :OH + 1, :OW + 1, :]
    p01 = x_nhwc[:, 0::2, 1::2, :][:, :OH + 1, :OW, :]
    p10 = x_nhwc[:, 1::2, 0::2, :][:, :OH, :OW + 1, :]
    p11 = x_nhwc[:, 1::2, 1::2, :][:, :OH, :OW, :]

    return pl.pallas_call(
        _maxpool_kernel,
        out_shape=jax.ShapeDtypeStruct((N, OH, OW, C), x_nhwc.dtype),
        grid=(N,),
        in_specs=[
            pl.BlockSpec((1, OH + 1, OW + 1, C), lambda n: (n, 0, 0, 0)),
            pl.BlockSpec((1, OH + 1, OW, C), lambda n: (n, 0, 0, 0)),
            pl.BlockSpec((1, OH, OW + 1, C), lambda n: (n, 0, 0, 0)),
            pl.BlockSpec((1, OH, OW, C), lambda n: (n, 0, 0, 0)),
        ],
        out_specs=pl.BlockSpec((1, OH, OW, C), lambda n: (n, 0, 0, 0)),
        compiler_params=pltpu.CompilerParams(
            dimension_semantics=("parallel",)),
    )(p00, p01, p10, p11)


# --------------------------- parameter creation ----------------------------- #

def make_basic_conv_params(key, cin, cout, k):
    kw, kg, kb, km, kv = jax.random.split(key, 5)
    return dict(
        w=(0.05 * jax.random.normal(kw, (cout, cin, k, k), jnp.float32)),
        gamma=1.0 + 0.1 * jax.random.normal(kg, (cout,), jnp.float32),
        beta=0.1 * jax.random.normal(kb, (cout,), jnp.float32),
        mean=0.1 * jax.random.normal(km, (cout,), jnp.float32),
        var=jnp.abs(1.0 + 0.1 * jax.random.normal(kv, (cout,), jnp.float32)),
    )


def make_inception_b_params(key, in_channels):
    k1, k2, k3, k4 = jax.random.split(key, 4)
    return dict(
        b3x3=make_basic_conv_params(k1, in_channels, 384, 3),
        db1=make_basic_conv_params(k2, in_channels, 64, 1),
        db2=make_basic_conv_params(k3, 64, 96, 3),
        db3=make_basic_conv_params(k4, 96, 96, 3),
    )


# ------------------------------ forward pass -------------------------------- #

def inception_b_forward(x_nchw, params):
    x = jnp.transpose(x_nchw, (0, 2, 3, 1))  # NCHW -> NHWC (boundary only)

    branch3x3 = conv_bn_relu(x, **params["b3x3"], stride=2, padding=0,
                             out_dtype=jnp.float32)

    b = conv_bn_relu(x, **params["db1"], stride=1, padding=0,
                     out_dtype=jnp.bfloat16)
    b = conv_bn_relu(b, **params["db2"], stride=1, padding=1,
                     out_dtype=jnp.bfloat16)
    branch3x3db = conv_bn_relu(b, **params["db3"], stride=2, padding=0,
                               out_dtype=jnp.float32)

    branchpool = maxpool3x3_s2(x)

    out = jnp.concatenate([branch3x3, branch3x3db, branchpool], axis=-1)
    return jnp.transpose(out, (0, 3, 1, 2))  # NHWC -> NCHW (torch.cat dim=1)


# ------------------------------- reference ---------------------------------- #

def _ref_conv_bn_relu(x_nhwc, w, gamma, beta, mean, var, *, stride, padding,
                      eps=1e-5):
    w_hwio = jnp.transpose(w, (2, 3, 1, 0))
    y = jax.lax.conv_general_dilated(
        x_nhwc, w_hwio, window_strides=(stride, stride),
        padding=[(padding, padding), (padding, padding)],
        dimension_numbers=("NHWC", "HWIO", "NHWC"))
    scale = gamma / jnp.sqrt(var + eps)
    shift = beta - mean * scale
    return jnp.maximum(y * scale + shift, 0.0)


def _ref_forward(x_nchw, params):
    x = jnp.transpose(x_nchw, (0, 2, 3, 1))
    b1 = _ref_conv_bn_relu(x, **params["b3x3"], stride=2, padding=0)
    b2 = _ref_conv_bn_relu(x, **params["db1"], stride=1, padding=0)
    b2 = _ref_conv_bn_relu(b2, **params["db2"], stride=1, padding=1)
    b2 = _ref_conv_bn_relu(b2, **params["db3"], stride=2, padding=0)
    bp = jax.lax.reduce_window(x, -jnp.inf, jax.lax.max,
                               (1, 3, 3, 1), (1, 2, 2, 1), "VALID")
    out = jnp.concatenate([b1, b2, bp], axis=-1)
    return jnp.transpose(out, (0, 3, 1, 2))


# --------------------------------- main -------------------------------------- #

if __name__ == "__main__":
    key = jax.random.PRNGKey(0)
    k_params, k_x = jax.random.split(key)

    N, C, H, W = 2, 4, 16, 16
    x = jax.random.normal(k_x, (N, C, H, W), jnp.float32)
    params = make_inception_b_params(k_params, C)

    out = jax.block_until_ready(inception_b_forward(x, params))
    assert out.shape == (N, 384 + 96 + C, 7, 7), out.shape

    ref = jax.block_until_ready(_ref_forward(x, params))
    assert jnp.allclose(out, ref, atol=2e-2, rtol=2e-2), (
        float(jnp.max(jnp.abs(out - ref))))

    print("KERNEL_OK")
</pallas_src>

<mosaic_0001>
module attributes {stable_mosaic.version = 11 : i64} {
  func.func @kernel(%arg0: i32, %arg1: memref<1x256x4xbf16, #tpu.memory_space<vmem>>, %arg2: memref<9x4x384xbf16, #tpu.memory_space<vmem>>, %arg3: memref<1x384xf32, #tpu.memory_space<vmem>>, %arg4: memref<1x56x384xf32, #tpu.memory_space<vmem>>) attributes {dimension_semantics = [#tpu.dimension_semantics<parallel>], iteration_bounds = array<i64: 2>, scalar_prefetch = 0 : i64, scratch_operands = 0 : i64, tpu.core_type = #tpu.core_type<tc>, window_params = [{transform_indices = @transform_0, window_bounds = array<i64: 1, 256, 4>}, {pipeline_mode = #tpu.pipeline_mode<synchronous>, transform_indices = @transform_1, window_bounds = array<i64: 9, 4, 384>}, {pipeline_mode = #tpu.pipeline_mode<synchronous>, transform_indices = @transform_2, window_bounds = array<i64: 1, 384>}, {transform_indices = @transform_3, window_bounds = array<i64: 1, 56, 384>}]} {
    %c0 = arith.constant 0 : index
    %c0_0 = arith.constant 0 : index
    %c0_1 = arith.constant 0 : index
    %0 = vector.load %arg1[%c0, %c0_0, %c0_1] : memref<1x256x4xbf16, #tpu.memory_space<vmem>>, vector<1x56x4xbf16>
    %1 = vector.shape_cast %0 : vector<1x56x4xbf16> to vector<56x4xbf16>
    %c0_2 = arith.constant 0 : index
    %c0_3 = arith.constant 0 : index
    %c0_4 = arith.constant 0 : index
    %2 = vector.load %arg2[%c0_2, %c0_3, %c0_4] : memref<9x4x384xbf16, #tpu.memory_space<vmem>>, vector<1x4x384xbf16>
    %3 = vector.shape_cast %2 : vector<1x4x384xbf16> to vector<4x384xbf16>
    %cst = arith.constant dense<0.000000e+00> : vector<56x384xf32>
    %4 = tpu.matmul %1, %3, %cst {dimension_numbers = #tpu.dot_dimension_numbers<[1], [0], [0], [1], [0, 0, 1, 1], [], []>} : vector<56x4xbf16>, vector<4x384xbf16>, vector<56x384xf32> -> vector<56x384xf32>
    %c0_5 = arith.constant 0 : index
    %c64 = arith.constant 64 : index
    %c0_6 = arith.constant 0 : index
    %5 = vector.load %arg1[%c0_5, %c64, %c0_6] : memref<1x256x4xbf16, #tpu.memory_space<vmem>>, vector<1x56x4xbf16>
    %6 = vector.shape_cast %5 : vector<1x56x4xbf16> to vector<56x4xbf16>
    %c1 = arith.constant 1 : index
    %c0_7 = arith.constant 0 : index
    %c0_8 = arith.constant 0 : index
    %7 = vector.load %arg2[%c1, %c0_7, %c0_8] : memref<9x4x384xbf16, #tpu.memory_space<vmem>>, vector<1x4x384xbf16>
    %8 = vector.shape_cast %7 : vector<1x4x384xbf16> to vector<4x384xbf16>
    %cst_9 = arith.constant dense<0.000000e+00> : vector<56x384xf32>
    %9 = tpu.matmul %6, %8, %cst_9 {dimension_numbers = #tpu.dot_dimension_numbers<[1], [0], [0], [1], [0, 0, 1, 1], [], []>} : vector<56x4xbf16>, vector<4x384xbf16>, vector<56x384xf32> -> vector<56x384xf32>
    %10 = arith.addf %4, %9 : vector<56x384xf32>
    %c0_10 = arith.constant 0 : index
    %c1_11 = arith.constant 1 : index
    %c0_12 = arith.constant 0 : index
    %11 = vector.load %arg1[%c0_10, %c1_11, %c0_12] : memref<1x256x4xbf16, #tpu.memory_space<vmem>>, vector<1x56x4xbf16>
    %12 = vector.shape_cast %11 : vector<1x56x4xbf16> to vector<56x4xbf16>
    %c2 = arith.constant 2 : index
    %c0_13 = arith.constant 0 : index
    %c0_14 = arith.constant 0 : index
    %13 = vector.load %arg2[%c2, %c0_13, %c0_14] : memref<9x4x384xbf16, #tpu.memory_space<vmem>>, vector<1x4x384xbf16>
    %14 = vector.shape_cast %13 : vector<1x4x384xbf16> to vector<4x384xbf16>
    %cst_15 = arith.constant dense<0.000000e+00> : vector<56x384xf32>
    %15 = tpu.matmul %12, %14, %cst_15 {dimension_numbers = #tpu.dot_dimension_numbers<[1], [0], [0], [1], [0, 0, 1, 1], [], []>} : vector<56x4xbf16>, vector<4x384xbf16>, vector<56x384xf32> -> vector<56x384xf32>
    %16 = arith.addf %10, %15 : vector<56x384xf32>
    %c0_16 = arith.constant 0 : index
    %c128 = arith.constant 128 : index
    %c0_17 = arith.constant 0 : index
    %17 = vector.load %arg1[%c0_16, %c128, %c0_17] : memref<1x256x4xbf16, #tpu.memory_space<vmem>>, vector<1x56x4xbf16>
    %18 = vector.shape_cast %17 : vector<1x56x4xbf16> to vector<56x4xbf16>
    %c3 = arith.constant 3 : index
    %c0_18 = arith.constant 0 : index
    %c0_19 = arith.constant 0 : index
    %19 = vector.load %arg2[%c3, %c0_18, %c0_19] : memref<9x4x384xbf16, #tpu.memory_space<vmem>>, vector<1x4x384xbf16>
    %20 = vector.shape_cast %19 : vector<1x4x384xbf16> to vector<4x384xbf16>
    %cst_20 = arith.constant dense<0.000000e+00> : vector<56x384xf32>
    %21 = tpu.matmul %18, %20, %cst_20 {dimension_numbers = #tpu.dot_dimension_numbers<[1], [0], [0], [1], [0, 0, 1, 1], [], []>} : vector<56x4xbf16>, vector<4x384xbf16>, vector<56x384xf32> -> vector<56x384xf32>
    %22 = arith.addf %16, %21 : vector<56x384xf32>
    %c0_21 = arith.constant 0 : index
    %c192 = arith.constant 192 : index
    %c0_22 = arith.constant 0 : index
    %23 = vector.load %arg1[%c0_21, %c192, %c0_22] : memref<1x256x4xbf16, #tpu.memory_space<vmem>>, vector<1x56x4xbf16>
    %24 = vector.shape_cast %23 : vector<1x56x4xbf16> to vector<56x4xbf16>
    %c4 = arith.constant 4 : index
    %c0_23 = arith.constant 0 : index
    %c0_24 = arith.constant 0 : index
    %25 = vector.load %arg2[%c4, %c0_23, %c0_24] : memref<9x4x384xbf16, #tpu.memory_space<vmem>>, vector<1x4x384xbf16>
    %26 = vector.shape_cast %25 : vector<1x4x384xbf16> to vector<4x384xbf16>
    %cst_25 = arith.constant dense<0.000000e+00> : vector<56x384xf32>
    %27 = tpu.matmul %24, %26, %cst_25 {dimension_numbers = #tpu.dot_dimension_numbers<[1], [0], [0], [1], [0, 0, 1, 1], [], []>} : vector<56x4xbf16>, vector<4x384xbf16>, vector<56x384xf32> -> vector<56x384xf32>
    %28 = arith.addf %22, %27 : vector<56x384xf32>
    %c0_26 = arith.constant 0 : index
    %c129 = arith.constant 129 : index
    %c0_27 = arith.constant 0 : index
    %29 = vector.load %arg1[%c0_26, %c129, %c0_27] : memref<1x256x4xbf16, #tpu.memory_space<vmem>>, vector<1x56x4xbf16>
    %30 = vector.shape_cast %29 : vector<1x56x4xbf16> to vector<56x4xbf16>
    %c5 = arith.constant 5 : index
    %c0_28 = arith.constant 0 : index
    %c0_29 = arith.constant 0 : index
    %31 = vector.load %arg2[%c5, %c0_28, %c0_29] : memref<9x4x384xbf16, #tpu.memory_space<vmem>>, vector<1x4x384xbf16>
    %32 = vector.shape_cast %31 : vector<1x4x384xbf16> to vector<4x384xbf16>
    %cst_30 = arith.constant dense<0.000000e+00> : vector<56x384xf32>
    %33 = tpu.matmul %30, %32, %cst_30 {dimension_numbers = #tpu.dot_dimension_numbers<[1], [0], [0], [1], [0, 0, 1, 1], [], []>} : vector<56x4xbf16>, vector<4x384xbf16>, vector<56x384xf32> -> vector<56x384xf32>
    %34 = arith.addf %28, %33 : vector<56x384xf32>
    %c0_31 = arith.constant 0 : index
    %c8 = arith.constant 8 : index
    %c0_32 = arith.constant 0 : index
    %35 = vector.load %arg1[%c0_31, %c8, %c0_32] : memref<1x256x4xbf16, #tpu.memory_space<vmem>>, vector<1x56x4xbf16>
    %36 = vector.shape_cast %35 : vector<1x56x4xbf16> to vector<56x4xbf16>
    %c6 = arith.constant 6 : index
    %c0_33 = arith.constant 0 : index
    %c0_34 = arith.constant 0 : index
    %37 = vector.load %arg2[%c6, %c0_33, %c0_34] : memref<9x4x384xbf16, #tpu.memory_space<vmem>>, vector<1x4x384xbf16>
    %38 = vector.shape_cast %37 : vector<1x4x384xbf16> to vector<4x384xbf16>
    %cst_35 = arith.constant dense<0.000000e+00> : vector<56x384xf32>
    %39 = tpu.matmul %36, %38, %cst_35 {dimension_numbers = #tpu.dot_dimension_numbers<[1], [0], [0], [1], [0, 0, 1, 1], [], []>} : vector<56x4xbf16>, vector<4x384xbf16>, vector<56x384xf32> -> vector<56x384xf32>
    %40 = arith.addf %34, %39 : vector<56x384xf32>
    %c0_36 = arith.constant 0 : index
    %c72 = arith.constant 72 : index
    %c0_37 = arith.constant 0 : index
    %41 = vector.load %arg1[%c0_36, %c72, %c0_37] : memref<1x256x4xbf16, #tpu.memory_space<vmem>>, vector<1x56x4xbf16>
    %42 = vector.shape_cast %41 : vector<1x56x4xbf16> to vector<56x4xbf16>
    %c7 = arith.constant 7 : index
    %c0_38 = arith.constant 0 : index
    %c0_39 = arith.constant 0 : index
    %43 = vector.load %arg2[%c7, %c0_38, %c0_39] : memref<9x4x384xbf16, #tpu.memory_space<vmem>>, vector<1x4x384xbf16>
    %44 = vector.shape_cast %43 : vector<1x4x384xbf16> to vector<4x384xbf16>
    %cst_40 = arith.constant dense<0.000000e+00> : vector<56x384xf32>
    %45 = tpu.matmul %42, %44, %cst_40 {dimension_numbers = #tpu.dot_dimension_numbers<[1], [0], [0], [1], [0, 0, 1, 1], [], []>} : vector<56x4xbf16>, vector<4x384xbf16>, vector<56x384xf32> -> vector<56x384xf32>
    %46 = arith.addf %40, %45 : vector<56x384xf32>
    %c0_41 = arith.constant 0 : index
    %c9 = arith.constant 9 : index
    %c0_42 = arith.constant 0 : index
    %47 = vector.load %arg1[%c0_41, %c9, %c0_42] : memref<1x256x4xbf16, #tpu.memory_space<vmem>>, vector<1x56x4xbf16>
    %48 = vector.shape_cast %47 : vector<1x56x4xbf16> to vector<56x4xbf16>
    %c8_43 = arith.constant 8 : index
    %c0_44 = arith.constant 0 : index
    %c0_45 = arith.constant 0 : index
    %49 = vector.load %arg2[%c8_43, %c0_44, %c0_45] : memref<9x4x384xbf16, #tpu.memory_space<vmem>>, vector<1x4x384xbf16>
    %50 = vector.shape_cast %49 : vector<1x4x384xbf16> to vector<4x384xbf16>
    %cst_46 = arith.constant dense<0.000000e+00> : vector<56x384xf32>
    %51 = tpu.matmul %48, %50, %cst_46 {dimension_numbers = #tpu.dot_dimension_numbers<[1], [0], [0], [1], [0, 0, 1, 1], [], []>} : vector<56x4xbf16>, vector<4x384xbf16>, vector<56x384xf32> -> vector<56x384xf32>
    %52 = arith.addf %46, %51 : vector<56x384xf32>
    %c0_47 = arith.constant 0 : index
    %c0_48 = arith.constant 0 : index
    %53 = vector.load %arg3[%c0_47, %c0_48] : memref<1x384xf32, #tpu.memory_space<vmem>>, vector<1x384xf32>
    %54 = vector.broadcast %53 : vector<1x384xf32> to vector<56x384xf32>
    %55 = arith.addf %52, %54 : vector<56x384xf32>
    %cst_49 = arith.constant 0.000000e+00 : f32
    %56 = vector.broadcast %cst_49 : f32 to vector<56x384xf32>
    %57 = arith.maximumf %55, %56 : vector<56x384xf32>
    %c0_50 = arith.constant 0 : index
    %c0_51 = arith.constant 0 : index
    %c0_52 = arith.constant 0 : index
    %58 = vector.load %arg4[%c0_50, %c0_51, %c0_52] : memref<1x56x384xf32, #tpu.memory_space<vmem>>, vector<1x56x384xf32>
    %59 = vector.shape_cast %58 : vector<1x56x384xf32> to vector<56x384xf32>
    %60 = vector.shape_cast %57 : vector<56x384xf32> to vector<1x56x384xf32>
    tpu.vector_store %arg4[%c0_50, %c0_51, %c0_52], %60 {strides = array<i32>} : memref<1x56x384xf32, #tpu.memory_space<vmem>>, vector<1x56x384xf32>,
    return
  }
  func.func @transform_0(%arg0: i32) -> (i32, i32, i32) {
    %c0_i32 = arith.constant 0 : i32
    %c0_i32_0 = arith.constant 0 : i32
    %c0_i32_1 = arith.constant 0 : i32
    return %arg0, %c0_i32, %c0_i32_0 : i32, i32, i32
  }
  func.func @transform_1(%arg0: i32) -> (i32, i32, i32) {
    %c0_i32 = arith.constant 0 : i32
    %c0_i32_0 = arith.constant 0 : i32
    %c0_i32_1 = arith.constant 0 : i32
    %c0_i32_2 = arith.constant 0 : i32
    return %c0_i32, %c0_i32_0, %c0_i32_1 : i32, i32, i32
  }
  func.func @transform_2(%arg0: i32) -> (i32, i32) {
    %c0_i32 = arith.constant 0 : i32
    %c0_i32_0 = arith.constant 0 : i32
    %c0_i32_1 = arith.constant 0 : i32
    return %c0_i32, %c0_i32_0 : i32, i32
  }
  func.func @transform_3(%arg0: i32) -> (i32, i32, i32) {
    %c0_i32 = arith.constant 0 : i32
    %c0_i32_0 = arith.constant 0 : i32
    %c0_i32_1 = arith.constant 0 : i32
    return %arg0, %c0_i32, %c0_i32_0 : i32, i32, i32
  }
}

</mosaic_0001>

<bundles_post_ra>
// kernel: tpu_custom_call.1
= control target key start
LH: loop header
LB: loop body
LE: loop exit
PB: predicated region body
PF: predicated region fallthrough
CT: control target
= control target key end

     0   :  { %8 = vsyncpa [#allocation3], 0  ;;  %s2950_s0 = inlined_call_operand.vmem [shape: bf16[2,256,4], index: 0, kind: input, shape index: {}]   ;;  %s2951_s1 = inlined_call_operand.vmem [shape: bf16[9,4,384], index: 1, kind: input, shape index: {}]   ;;  %s2952_s2 = inlined_call_operand.vmem [shape: f32[1,384], index: 2, kind: input, shape index: {}]   ;;  %s2953_s3 = inlined_call_operand.hbm [shape: f32[2,56,384], index: 3, kind: output, shape index: {}]  }
   0x1   :  { %10 = vsyncpa [#allocation3 + $0x1], 0  ;;  %s2184_s12 = smov 0   ;;  %s2186_s13 = smov 0  }
   0x2   :  { %s2188_s14 = smov 0   ;;  %s2190_s15 = smov 0  }
   0x3 LB: > { %s2205_s16 = sadd.s32 4294967295, %s2160_s15   ;;  %s1776_s17 = sadd.s32 4294967294, %s2160_s15   ;;  %s2160_s15 = sphi %s2190_s15, %s2959_s15   ;;  %s2156_s14 = sphi %s2188_s14, %s2958_s14   ;;  %s2152_s13 = sphi %s2186_s13, %s2957_s13   ;;  %s2148_s12 = sphi %s2184_s12, %s2956_s12  }
   0x4   : > { %s2209_s18 = sadd.s32 1, %s2160_s15   ;;  %s91_s19 = sadd.s32 1, %s2156_s14 }
   0x5   : > { %s88_s20 = ssub.s32 %s2160_s15, %s2209_s18  ;;  %p101_p0 = scmp.ne.s32.totalorder %s2156_s14, %s2152_s13 }
   0x6   : > { %p89_p1 = scmp.eq.s32.totalorder %s88_s20, 0  ;;  %p102_p2 = scmp.eq.s32.totalorder %s2205_s16, 1 }
   0x7   : > { %p107_p3 = scmp.ne.s32.totalorder %s2152_s13, %s2148_s12  ;;  %p108_p4 = scmp.eq.s32.totalorder %s1776_s17, 1 }
   0x8   : > { %s2220_s21 = scalar_select %p89_p1, %s2156_s14, %s91_s19  }
   0x9   : > { %p2222_p5 = por %p102_p2, %p101_p0  ;;  %p2226_p6 = por %p108_p4, %p107_p3 }
   0xa   : > { %p1779_p7 = scmp.ge.s32.totalorder %s2160_s15, 1  ;;  %p140_p8 = scmp.lt.s32.totalorder %s2160_s15, 3 }
   0xc   : > { %p141_p9 = pnand %p1779_p7, %p140_p8 }
   0xd   : > { %p164_p10 = scmp.lt.s32.totalorder (!%p141_p9), %s2205_s16, 1  ;;  %s161_s4 = sand.u32 (!%p141_p9), 1, %s2152_s13  }
   0xe   : > { %144 = sbr.rel (%p141_p9) target bundleno = 593 (0x251), region = 32  ;;  %s1699_s17 = scalar_lea.sflag (!%p141_p9), [#allocation3], %s161_s4 }
   0xf   : > { %s2055_s5 = smul.u32 (!%p141_p9), 168, %s161_s4 }
  0x10   : > { %s2056_s7 = smul.u32 (!%p141_p9), 168, %s2205_s16 }
  0x11   : > { %s2842_s6 = scalar_lea.vmem (!%p141_p9), [#allocation2], %s2055_s5 }
  0x12   : > { %s1710_s10 = scalar_lea.hbm (!%p141_p9), %s2953_s3, %s2056_s7 }
  0x13   : > { %v1782_v0 = vld [vmem:[%s2951_s1 + $0x6] sm:$0x3f]  ;;  %s165_s26 = scalar_select %p164_p10, %s2205_s16, 1  ;;  %vm223_vm0 = vcmask 1041408   ;;  %v177_v1 = vld [vmem:[%s2951_s1] sm:$0x3f] }
  0x14   : > { %206 = vst [vmem:[#allocation1] ss:$4 sm:$0xff] %v1782_v0  ;;  %vm210_vm1 = vcmask 31744   ;;  %v1831_v10 = vld [vmem:[%s2951_s1 + $0xc] sm:$0x3f]  ;;  %s1711_s16 = sshll.u32 %s2842_s6, 4  ;;  %s1712_s16 = int_to_ptr.vmem [resolvable:$true] %s1711_s16 }
  0x15   : > { %s2021_s27 = sshll.u32 %s165_s26, 7  ;;  %v1860_v22 = vld [vmem:[%s2951_s1 + $0x12] sm:$0x3f]  ;;  %vm469_vm2 = vsmask.f32 7424  ;;  %s1713_s11 = sshll.u32 %s1710_s10, 4  ;;  %s1714_s11 = int_to_ptr.hbm [resolvable:$true] %s1713_s11 }
  0x16   : > { %s2240_s30 = scalar_lea.vmem %s2950_s0, %s2021_s27  ;;  %s2112_s19 = sshra.s32 %s1714_s11, 4  ;;  %s2113_s19 = int_to_ptr.hbm [resolvable:$true] %s2112_s19 }
  0x17   : > { %v2025_v2 = vld [vmem:[%s2240_s30 + $0x20] sm:$0xff]  ;;  %v2026_v8 = vld [vmem:[%s2240_s30 + $0x28] sm:$0xff]  ;;  %v2027_v16 = vld [vmem:[%s2240_s30 + $0x30] sm:$0xff]  ;;  %s2114_s20 = scalar_lea.hbm %s2113_s19, 168  ;;  %s2118_s26 = scalar_lea.hbm %s2953_s3, 336 }
  0x18   : > { %v184_v24 = vld [vmem:[%s2240_s30 + $0x38] sm:$0xf]  ;;  %v2028_v29 = vld [vmem:[%s2240_s30] sm:$0xff]  ;;  %v2029_v32 = vld [vmem:[%s2240_s30 + $0x8] sm:$0xff]  ;;  %p2115_p11 = scmp.ne.s32.totalorder %s2113_s19, %s2114_s20  ;;  %p2119_p0 = scmp.lt.s32.totalorder %s2113_s19, %s2953_s3 }
  0x19   : > { %v200_v25 = vunpack.c.l.b16 %v184_v24  ;;  %v473_v33 = vshll.u32 %v2028_v29, 16  ;;  %v471_v35 = vshrl.u32 %v2028_v29, 16  ;;  %v478_v37 = vshll.u32 %v2029_v32, 16  ;;  %v2022_v40 = vld [vmem:[%s2240_s30] sm:$0xff]  ;;  %v2030_v42 = vld [vmem:[%s2240_s30 + $0x10] sm:$0xff]  ;;  %v2023_v47 = vld [vmem:[%s2240_s30 + $0x8] sm:$0xff]  ;;  %p2120_p1 = scmp.lt.s32.totalorder %s2118_s26, %s2114_s20 }
  0x1a   : > { %v482_v43 = vshrl.u32 %v2029_v32, 16  ;;  %v486_v44 = vshll.u32 %v2030_v42, 16  ;;  %v1846_v49 = vld [vmem:[%s2240_s30 + $0x18] sm:$0xf]  ;;  %v2031_v50 = vld [vmem:[%s2240_s30 + $0x18] sm:$0x10]  ;;  %p2116_p12 = pnand %p2115_p11, %p2222_p5 }
  0x1b   : > { %v207_v3 = vld.sshfl [vmem:[#allocation1] sm:$0xff pattern:$0x73625140]  ;;  %v208_v4 = vld.sshfl [vmem:[#allocation1 + $0x8] sm:$0xff pattern:$0x73625140]  ;;  %v204_v28 = vpack.c.b16 %v200_v25, %v200_v25  ;;  %v1847_v51 = vor.u32 %v2031_v50, %v1846_v49  ;;  %p2121_p2 = por %p2120_p1, %p2119_p0 }
  0x1c   : > { %v224_v5 = vsel %vm223_vm0, %v207_v3, 0  ;;  %v226_v6 = vsel %vm223_vm0, %v208_v4, 0  ;;  %v209_v7 = vld.sshfl [vmem:[#allocation1 + $0x10] sm:$0xff pattern:$0x73625140]  ;;  %v475_v36 = vrot.slane %v473_v33, 1  ;;  %p2117_p13 = pneg %p2116_p12 }
  0x1d   : > { %237 = vmatpush.bf16.msra.mxu0 %v224_v5  ;;  %2052 = vmatpush.bf16.msra.mxu3 %v224_v5  ;;  %v228_v9 = vsel %vm223_vm0, %v209_v7, 0  ;;  %333 = vst [vmem:[#allocation1] ss:$4 sm:$0xff] %v177_v1  ;;  %v480_v39 = vrot.slane %v478_v37, 1  ;;  %v488_v46 = vrot.slane %v486_v44, 1  ;;  %v490_v52 = vshrl.u32 %v2030_v42, 16 }
  0x1e   : > { %2053 = vmatpush.bf16.msra.mxu1 %v226_v6  ;;  %2054 = vmatpush.bf16.msra.mxu2 %v228_v9  ;;  %v476_v38 = vor.u32 %v475_v36, %v471_v35  ;;  %v494_v53 = vshll.u32 %v1847_v51, 16  ;;  %v2024_v56 = vld [vmem:[%s2240_s30 + $0x10] sm:$0xff]  ;;  %v176_v60 = vld [vmem:[%s2240_s30 + $0x18] sm:$0xf]  ;;  %v498_v62 = vshrl.u32 %v1847_v51, 16  ;;  %p2122_p3 = pnand %p2121_p2, %p2117_p13 }
  0x1f   : > { %v484_v45 = vor.u32 %v482_v43, %v480_v39  ;;  %v492_v54 = vor.u32 %v490_v52, %v488_v46  ;;  %v327_v61 = vunpack.c.l.b16 %v176_v60  ;;  %v1885_v1 = vld [vmem:[%s2951_s1 + $0x18] sm:$0x3f]  ;;  %v1910_v29 = vld [vmem:[%s2951_s1 + $0x1e] sm:$0x3f] }
  0x20   : > { %1795 = vmatmul.msk.bf16.vlgmr.msra.gmra.mxu0 %vm210_vm1, %v2025_v2  ;;  %1796 = vmatmul.msk.bf16.vlgmr.msra.gmra.mxu3 %vm210_vm1, %v2026_v8  ;;  %v481_v41 = vsel %vm469_vm2, %v476_v38, %v480_v39  ;;  %v496_v55 = vrot.slane %v494_v53, 1  ;;  %v635_v25 = vld [vmem:[%s2240_s30 + $0x58] sm:$0xf] }
  0x21   : > { %265 = vmatpush.bf16.msrb.mxu0 %v226_v6  ;;  %1800 = vmatmul.msk.bf16.vlgmr.msra.gmra.mxu1 %vm210_vm1, %v2026_v8  ;;  %v489_v48 = vsel %vm469_vm2, %v484_v45, %v488_v46  ;;  %v331_v63 = vpack.c.b16 %v327_v61, %v327_v61  ;;  %v2035_v46 = vld [vmem:[%s2240_s30 + $0x60] sm:$0xff] }
  0x22   : > { %1804 = vmatmul.msk.bf16.vlgmr.msra.gmra.mxu2 %vm210_vm1, %v2026_v8  ;;  %v497_v57 = vsel %vm469_vm2, %v492_v54, %v496_v55  ;;  %v500_v0 = vor.u32 %v498_v62, %v496_v55  ;;  %v2314_v8 = vld [vmem:[%s2240_s30 + $0x40] sm:$0xff] }
  0x24   : > { %v334_v11 = vld.sshfl [vmem:[#allocation1] sm:$0xff pattern:$0x73625140]  ;;  %v335_v12 = vld.sshfl [vmem:[#allocation1 + $0x8] sm:$0xff pattern:$0x73625140] }
  0x25   : > { %293 = vmatpush.bf16.msra.mxu0 %v228_v9  ;;  %v336_v13 = vld.sshfl [vmem:[#allocation1 + $0x10] sm:$0xff pattern:$0x73625140]  ;;  %v349_v14 = vsel %vm223_vm0, %v334_v11, 0  ;;  %v351_v20 = vsel %vm223_vm0, %v335_v12, 0 }
  0x26   : > { %362 = vmatpush.bf16.msrb.mxu3 %v349_v14  ;;  %502 = vst [vmem:[#allocation1] ss:$4 sm:$0xff] %v1831_v10  ;;  %v353_v15 = vsel %vm223_vm0, %v336_v13, 0  ;;  %v2325_v10 = vld [vmem:[%s2240_s30 + $0x48] sm:$0xff] }
  0x27   : > { %418 = vmatpush.bf16.msrb.mxu1 %v353_v15 }
  0x2d   : > { %v503_v17 = vld.sshfl [vmem:[#allocation1] sm:$0xff pattern:$0x73625140]  ;;  %v505_v19 = vld.sshfl [vmem:[#allocation1 + $0x10] sm:$0xff pattern:$0x73625140] }
  0x2e   : > { %v518_v18 = vsel %vm223_vm0, %v503_v17, 0  ;;  %v504_v21 = vld.sshfl [vmem:[#allocation1 + $0x8] sm:$0xff pattern:$0x73625140]  ;;  %v522_v30 = vsel %vm223_vm0, %v505_v19, 0  ;;  %v2348_v19 = vld [vmem:[%s2240_s30 + $0x50] sm:$0xff] }
  0x2f   : > { %531 = vmatpush.bf16.msrb.mxu2 %v518_v18  ;;  %v520_v23 = vsel %vm223_vm0, %v504_v21, 0  ;;  %657 = vst [vmem:[#allocation1] ss:$4 sm:$0xff] %v1860_v22 }
  0x30   : > { %1797 = vmatmul.msk.bf16.gmra.mxu3 %vm210_vm1, %v2027_v16  ;;  %1799 = vmatmul.msk.bf16.vlgmr.msrb.gmra.mxu0 %vm210_vm1, %v2025_v2 }
  0x31   : > { %1801 = vmatmul.msk.bf16.gmra.mxu1 %vm210_vm1, %v2027_v16  ;;  %390 = vmatpush.bf16.msrb.mxu0 %v351_v20 }
  0x32   : > { %1805 = vmatmul.msk.bf16.gmra.mxu2 %vm210_vm1, %v2027_v16  ;;  %559 = vmatpush.bf16.msra.mxu3 %v520_v23 }
  0x36   : > { %v659_v26 = vld.sshfl [vmem:[#allocation1 + $0x8] sm:$0xff pattern:$0x73625140]  ;;  %v658_v31 = vld.sshfl [vmem:[#allocation1] sm:$0xff pattern:$0x73625140] }
  0x37   : > { %v675_v27 = vsel %vm223_vm0, %v659_v26, 0  ;;  %v673_v34 = vsel %vm223_vm0, %v658_v31, 0  ;;  %v660_v58 = vld.sshfl [vmem:[#allocation1 + $0x10] sm:$0xff pattern:$0x73625140]  ;;  %v651_v26 = vunpack.c.l.b16 %v635_v25 }
  0x38   : > { %714 = vmatpush.bf16.msra.mxu2 %v675_v27  ;;  %686 = vmatpush.bf16.msra.mxu1 %v673_v34  ;;  %v677_v59 = vsel %vm223_vm0, %v660_v58, 0  ;;  %812 = vst [vmem:[#allocation1] ss:$4 sm:$0xff] %v1885_v1  ;;  %v1939_v34 = vld [vmem:[%s2951_s1 + $0x24] sm:$0x3f] }
  0x39   : > { %v2372_v31 = vpack.c.b16 %v651_v26, %v651_v26  ;;  %v2037_v26 = vld [vmem:[%s2240_s30 + $0x70] sm:$0xff] }
  0x3f   : > { %v813_v3 = vld.sshfl [vmem:[#allocation1] sm:$0xff pattern:$0x73625140]  ;;  %v814_v6 = vld.sshfl [vmem:[#allocation1 + $0x8] sm:$0xff pattern:$0x73625140] }
  0x40   : > { %1798 = vmatmul.msk.bf16.gmra.mxu3 %vm210_vm1, %v204_v28  ;;  %1803 = vmatmul.msk.bf16.vlgmr.msra.gmra.mxu0 %vm210_vm1, %v2025_v2  ;;  %v815_v2 = vld.sshfl [vmem:[#allocation1 + $0x10] sm:$0xff pattern:$0x73625140]  ;;  %v828_v5 = vsel %vm223_vm0, %v813_v3, 0  ;;  %v830_v7 = vsel %vm223_vm0, %v814_v6, 0 }
  0x41   : > { %1802 = vmatmul.msk.bf16.gmra.mxu1 %vm210_vm1, %v204_v28  ;;  %587 = vmatpush.bf16.msra.mxu0 %v522_v30  ;;  %v832_v4 = vsel %vm223_vm0, %v815_v2, 0  ;;  %1001 = vst [vmem:[#allocation1] ss:$4 sm:$0xff] %v1910_v29 }
  0x42   : > { %1806 = vmatmul.msk.bf16.gmra.mxu2 %vm210_vm1, %v204_v28 }
  0x48   : > { %v1002_v36 = vld.sshfl [vmem:[#allocation1] sm:$0xff pattern:$0x73625140]  ;;  %v1003_v37 = vld.sshfl [vmem:[#allocation1 + $0x8] sm:$0xff pattern:$0x73625140] }
  0x49   : > { %v1004_v39 = vld.sshfl [vmem:[#allocation1 + $0x10] sm:$0xff pattern:$0x73625140] }
  0x4a   : > { %1156 = vst [vmem:[#allocation1] ss:$4 sm:$0xff] %v1939_v34  ;;  %v1021_v43 = vsel %vm223_vm0, %v1004_v39, 0 }
  0x50   : > { %1819 = vmatmul.msk.bf16.vlgmr.msrb.gmra.mxu3 %vm210_vm1, %v2022_v40  ;;  %1823 = vmatmul.msk.bf16.vlgmr.msrb.gmra.mxu0 %vm210_vm1, %v2022_v40 }
  0x51   : > { %1827 = vmatmul.msk.bf16.vlgmr.msrb.gmra.mxu1 %vm210_vm1, %v2022_v40  ;;  %742 = vmatpush.bf16.msrb.mxu3 %v677_v59  ;;  %v1017_v40 = vsel %vm223_vm0, %v1002_v36, 0 }
  0x52   : > { %1848 = vmatmul.msk.bf16.vlgmr.msrb.gmra.mxu2 %vm210_vm1, %v481_v41  ;;  %841 = vmatpush.bf16.msrb.mxu0 %v828_v5 }
  0x53   : > { %897 = vmatpush.bf16.msrb.mxu2 %v832_v4  ;;  %869 = vmatpush.bf16.msrb.mxu1 %v830_v7 }
  0x60   : > { %1820 = vmatmul.msk.bf16.gmra.mxu3 %vm210_vm1, %v2023_v47  ;;  %1824 = vmatmul.msk.bf16.gmra.mxu0 %vm210_vm1, %v2023_v47 }
  0x61   : > { %1828 = vmatmul.msk.bf16.gmra.mxu1 %vm210_vm1, %v2023_v47 }
  0x62   : > { %1849 = vmatmul.msk.bf16.gmra.mxu2 %vm210_vm1, %v489_v48 }
  0x70   : > { %1821 = vmatmul.msk.bf16.gmra.mxu3 %vm210_vm1, %v2024_v56  ;;  %1825 = vmatmul.msk.bf16.gmra.mxu0 %vm210_vm1, %v2024_v56 }
  0x71   : > { %1829 = vmatmul.msk.bf16.gmra.mxu1 %vm210_vm1, %v2024_v56 }
  0x72   : > { %1850 = vmatmul.msk.bf16.gmra.mxu2 %vm210_vm1, %v497_v57 }
  0x80   : > { %1822 = vmatmul.msk.bf16.gmra.mxu3 %vm210_vm1, %v331_v63  ;;  %1826 = vmatmul.msk.bf16.gmra.mxu0 %vm210_vm1, %v331_v63 }
  0x81   : > { %1830 = vmatmul.msk.bf16.gmra.mxu1 %vm210_vm1, %v331_v63 }
  0x82   : > { %1851 = vmatmul.msk.bf16.gmra.mxu2 %vm210_vm1, %v500_v0 }
  0x90   : > { %1852 = vmatmul.msk.bf16.vlgmr.msra.gmra.mxu3 %vm210_vm1, %v481_v41  ;;  %1856 = vmatmul.msk.bf16.vlgmr.msra.gmra.mxu0 %vm210_vm1, %v481_v41  ;;  %v1019_v41 = vsel %vm223_vm0, %v1003_v37, 0  ;;  %v790_v37 = vld [vmem:[%s2240_s30 + $0x78] sm:$0xf] }
  0x91   : > { %1873 = vmatmul.msk.bf16.vlgmr.msra.gmra.mxu1 %vm210_vm1, %v2314_v8  ;;  %1030 = vmatpush.bf16.msra.mxu3 %v1017_v40  ;;  %v806_v40 = vunpack.c.l.b16 %v790_v37 }
  0x92   : > { %1877 = vmatmul.msk.bf16.vlgmr.msra.gmra.mxu2 %vm210_vm1, %v2314_v8  ;;  %1058 = vmatpush.bf16.msra.mxu0 %v1019_v41 }
  0x93   : > { %1086 = vmatpush.bf16.msra.mxu1 %v1021_v43 }
  0x9d   : > { %v2322_v9 = vpop.f32.mrf.mxu0 }
  0x9e   : > { %v2327_v11 = vpop.f32.mrf.mxu1 }
  0xa0   : > { %1853 = vmatmul.msk.bf16.gmra.mxu3 %vm210_vm1, %v489_v48  ;;  %1857 = vmatmul.msk.bf16.gmra.mxu0 %vm210_vm1, %v489_v48  ;;  %v1157_v48 = vld.sshfl [vmem:[#allocation1] sm:$0xff pattern:$0x73625140] }
  0xa1   : > { %1874 = vmatmul.msk.bf16.gmra.mxu1 %vm210_vm1, %v2325_v10  ;;  %v1172_v51 = vsel %vm223_vm0, %v1157_v48, 0 }
  0xa2   : > { %1878 = vmatmul.msk.bf16.gmra.mxu2 %vm210_vm1, %v2325_v10 }
  0xa3   : > { %v2335_v12 = vpop.f32.mrf.mxu3  ;;  %1185 = vmatpush.bf16.msra.mxu2 %v1172_v51 }
  0xa5   : > { %v2337_v13 = vpop.f32.mrf.mxu2  ;;  %v2339_v14 = vpop.f32.mrf.mxu0 }
  0xa6   : > { %v2341_v15 = vpop.f32.mrf.mxu1 }
  0xab   : > { %v2343_v16 = vpop.f32.mrf.mxu3 }
  0xad   : > { %v2345_v17 = vpop.f32.mrf.mxu2  ;;  %v267_v18 = vpop.f32.mrf.mxu0 }
  0xae   : > { %v2350_v20 = vpop.f32.mrf.mxu1 }
  0xb0   : > { %1854 = vmatmul.msk.bf16.gmra.mxu3 %vm210_vm1, %v497_v57  ;;  %1858 = vmatmul.msk.bf16.gmra.mxu0 %vm210_vm1, %v497_v57 }
  0xb1   : > { %1875 = vmatmul.msk.bf16.gmra.mxu1 %vm210_vm1, %v2348_v19 }
  0xb2   : > { %1879 = vmatmul.msk.bf16.gmra.mxu2 %vm210_vm1, %v2348_v19 }
  0xb3   : > { %v2358_v21 = vpop.f32.mrf.mxu3 }
  0xb5   : > { %v2360_v22 = vpop.f32.mrf.mxu2  ;;  %v269_v23 = vpop.f32.mrf.mxu0 }
  0xb6   : > { %v2362_v24 = vpop.f32.mrf.mxu1 }
  0xbb   : > { %v2365_v27 = vpop.f32.mrf.mxu3 }
  0xbd   : > { %v2367_v28 = vpop.f32.mrf.mxu2  ;;  %v295_v30 = vpop.f32.mrf.mxu0 }
  0xbe   : > { %v2374_v32 = vpop.f32.mrf.mxu1 }
  0xc0   : > { %1855 = vmatmul.msk.bf16.gmra.mxu3 %vm210_vm1, %v500_v0  ;;  %1859 = vmatmul.msk.bf16.gmra.mxu0 %vm210_vm1, %v500_v0  ;;  %v2036_v0 = vld [vmem:[%s2240_s30 + $0x68] sm:$0xff] }
  0xc1   : > { %1876 = vmatmul.msk.bf16.gmra.mxu1 %vm210_vm1, %v2372_v31 }
  0xc2   : > { %1880 = vmatmul.msk.bf16.gmra.mxu2 %vm210_vm1, %v2372_v31 }
  0xc3   : > { %v2382_v33 = vpop.f32.mrf.mxu3 }
  0xc5   : > { %v2387_v35 = vpop.f32.mrf.mxu2  ;;  %v297_v38 = vpop.f32.mrf.mxu0 }
  0xc6   : > { %v284_v42 = vpop.f32.mrf.mxu1 }
  0xcb   : > { %v256_v44 = vpop.f32.mrf.mxu3 }
  0xcc   : > { %v810_v44 = vpack.c.b16 %v806_v40, %v806_v40 }
  0xcd   : > { %v312_v45 = vpop.f32.mrf.mxu2  ;;  %v392_v47 = vpop.f32.mrf.mxu0 }
  0xce   : > { %v2393_v49 = vadd.f32 %v392_v47, %v267_v18  ;;  %v420_v50 = vpop.f32.mrf.mxu1  ;;  %v1159_v45 = vld.sshfl [vmem:[#allocation1 + $0x10] sm:$0xff pattern:$0x73625140]  ;;  %v2038_v47 = vld [vmem:[%s2240_s30 + $0x40] sm:$0xff] }
  0xcf   : > { %v2396_v52 = vadd.f32 %v420_v50, %v295_v30 }
  0xd0   : > { %1881 = vmatmul.msk.bf16.vlgmr.msrb.gmra.mxu3 %vm210_vm1, %v2314_v8  ;;  %1898 = vmatmul.msk.bf16.vlgmr.msrb.gmra.mxu0 %vm210_vm1, %v2035_v46 }
  0xd1   : > { %1902 = vmatmul.msk.bf16.vlgmr.msrb.gmra.mxu1 %vm210_vm1, %v2035_v46 }
  0xd2   : > { %1906 = vmatmul.msk.bf16.vlgmr.msrb.gmra.mxu2 %vm210_vm1, %v2035_v46 }
  0xd3   : > { %v364_v53 = vpop.f32.mrf.mxu3 }
  0xd4   : > { %v365_v54 = vadd.f32 %v364_v53, %v2322_v9  ;;  %v972_v53 = vshll.u32 %v2038_v47, 16 }
  0xd5   : > { %v533_v55 = vpop.f32.mrf.mxu2  ;;  %v394_v56 = vpop.f32.mrf.mxu0 }
  0xd6   : > { %v2404_v57 = vadd.f32 %v394_v56, %v269_v23  ;;  %v422_v58 = vpop.f32.mrf.mxu1  ;;  %v2406_v59 = vadd.f32 %v533_v55, %v365_v54  ;;  %v1176_v56 = vsel %vm223_vm0, %v1159_v45, 0 }
  0xd7   : > { %v2408_v60 = vadd.f32 %v422_v58, %v297_v38  ;;  %1241 = vmatpush.bf16.msrb.mxu0 %v1176_v56 }
  0xdb   : > { %v366_v61 = vpop.f32.mrf.mxu3 }
  0xdc   : > { %v367_v62 = vadd.f32 %v366_v61, %v2339_v14  ;;  %v970_v61 = vshrl.u32 %v2038_v47, 16 }
  0xdd   : > { %v535_v63 = vpop.f32.mrf.mxu2  ;;  %v397_v1 = vpop.f32.mrf.mxu0 }
  0xde   : > { %v2413_v2 = vadd.f32 %v397_v1, %v2327_v11  ;;  %v425_v3 = vpop.f32.mrf.mxu1  ;;  %v2415_v4 = vadd.f32 %v535_v63, %v367_v62  ;;  %v974_v62 = vrot.slane %v972_v53, 1 }
  0xdf   : > { %v2418_v5 = vadd.f32 %v425_v3, %v2337_v13 }
  0xe0   : > { %1882 = vmatmul.msk.bf16.gmra.mxu3 %vm210_vm1, %v2325_v10  ;;  %1899 = vmatmul.msk.bf16.gmra.mxu0 %vm210_vm1, %v2036_v0 }
  0xe1   : > { %1903 = vmatmul.msk.bf16.gmra.mxu1 %vm210_vm1, %v2036_v0 }
  0xe2   : > { %1907 = vmatmul.msk.bf16.gmra.mxu2 %vm210_vm1, %v2036_v0 }
  0xe3   : > { %v369_v6 = vpop.f32.mrf.mxu3 }
  0xe4   : > { %v370_v7 = vadd.f32 %v369_v6, %v2335_v12 }
  0xe5   : > { %v538_v8 = vpop.f32.mrf.mxu2  ;;  %v399_v9 = vpop.f32.mrf.mxu0 }
  0xe6   : > { %v2427_v11 = vadd.f32 %v399_v9, %v2341_v15  ;;  %v427_v13 = vpop.f32.mrf.mxu1  ;;  %v2429_v14 = vadd.f32 %v538_v8, %v370_v7  ;;  %v975_v8 = vor.u32 %v974_v62, %v970_v61 }
  0xe7   : > { %v2432_v18 = vadd.f32 %v427_v13, %v2345_v17 }
  0xeb   : > { %v371_v10 = vpop.f32.mrf.mxu3 }
  0xec   : > { %v372_v23 = vadd.f32 %v371_v10, %v2343_v16 }
  0xed   : > { %v540_v25 = vpop.f32.mrf.mxu2  ;;  %v402_v29 = vpop.f32.mrf.mxu0 }
  0xee   : > { %v2437_v12 = vadd.f32 %v402_v29, %v2350_v20  ;;  %v430_v30 = vpop.f32.mrf.mxu1  ;;  %v2439_v34 = vadd.f32 %v540_v25, %v372_v23  ;;  %v2487_v25 = vld [vmem:[%s2240_s30 + $0x4] sm:$0xff] }
  0xef   : > { %v2442_v15 = vadd.f32 %v430_v30, %v2360_v22 }
  0xf0   : > { %1883 = vmatmul.msk.bf16.gmra.mxu3 %vm210_vm1, %v2348_v19  ;;  %1900 = vmatmul.msk.bf16.gmra.mxu0 %vm210_vm1, %v2037_v26 }
  0xf1   : > { %1904 = vmatmul.msk.bf16.gmra.mxu1 %vm210_vm1, %v2037_v26 }
  0xf2   : > { %1908 = vmatmul.msk.bf16.gmra.mxu2 %vm210_vm1, %v2037_v26 }
  0xf3   : > { %v374_v16 = vpop.f32.mrf.mxu3 }
  0xf4   : > { %v375_v17 = vadd.f32 %v374_v16, %v2358_v21  ;;  %v1158_v21 = vld.sshfl [vmem:[#allocation1 + $0x8] sm:$0xff pattern:$0x73625140]  ;;  %v2040_v16 = vld [vmem:[%s2240_s30 + $0x50] sm:$0xff] }
  0xf5   : > { %v543_v20 = vpop.f32.mrf.mxu2  ;;  %v404_v36 = vpop.f32.mrf.mxu0  ;;  %v989_v56 = vshrl.u32 %v2040_v16, 16 }
  0xf6   : > { %v2452_v38 = vadd.f32 %v404_v36, %v2362_v24  ;;  %v432_v22 = vpop.f32.mrf.mxu1  ;;  %v2454_v39 = vadd.f32 %v543_v20, %v375_v17  ;;  %v1174_v24 = vsel %vm223_vm0, %v1158_v21, 0 }
  0xf7   : > { %v2457_v19 = vadd.f32 %v432_v22, %v2367_v28  ;;  %1213 = vmatpush.bf16.msrb.mxu3 %v1174_v24  ;;  %v985_v22 = vshll.u32 %v2040_v16, 16  ;;  %v2513_v24 = vld [vmem:[%s2240_s30 + $0xc] sm:$0xff] }
  0xfb   : > { %v376_v41 = vpop.f32.mrf.mxu3 }
  0xfc   : > { %v377_v42 = vadd.f32 %v376_v41, %v2365_v27  ;;  %v1964_v27 = vld [vmem:[%s2951_s1 + $0x2a] sm:$0x3f] }
  0xfd   : > { %v545_v43 = vpop.f32.mrf.mxu2  ;;  %v407_v46 = vpop.f32.mrf.mxu0  ;;  %1311 = vst [vmem:[#allocation1] ss:$4 sm:$0xff] %v1964_v27 }
  0xfe   : > { %v2463_v48 = vadd.f32 %v407_v46, %v2374_v32  ;;  %v435_v50 = vpop.f32.mrf.mxu1  ;;  %v2465_v51 = vadd.f32 %v545_v43, %v377_v42  ;;  %v2039_v32 = vld [vmem:[%s2240_s30 + $0x48] sm:$0xff] }
  0xff   : > { %v2468_v28 = vadd.f32 %v435_v50, %v2387_v35  ;;  %v977_v63 = vshll.u32 %v2039_v32, 16  ;;  %v981_v37 = vshrl.u32 %v2039_v32, 16  ;;  %v1925_v32 = vld [vmem:[%s2240_s30 + $0x58] sm:$0xf] }
 0x100   : > { %1884 = vmatmul.msk.bf16.gmra.mxu3 %vm210_vm1, %v2372_v31  ;;  %1901 = vmatmul.msk.bf16.gmra.mxu0 %vm210_vm1, %v810_v44 }
 0x101   : > { %1905 = vmatmul.msk.bf16.gmra.mxu1 %vm210_vm1, %v810_v44 }
 0x102   : > { %1909 = vmatmul.msk.bf16.gmra.mxu2 %vm210_vm1, %v810_v44  ;;  %v987_v44 = vrot.slane %v985_v22, 1 }
 0x103   : > { %v379_v54 = vpop.f32.mrf.mxu3 }
 0x104   : > { %v380_v35 = vadd.f32 %v379_v54, %v2382_v33  ;;  %v1313_v1 = vld.sshfl [vmem:[#allocation1 + $0x8] sm:$0xff pattern:$0x73625140]  ;;  %v1312_v3 = vld.sshfl [vmem:[#allocation1] sm:$0xff pattern:$0x73625140] }
 0x105   : > { %v548_v55 = vpop.f32.mrf.mxu2  ;;  %v409_v58 = vpop.f32.mrf.mxu0  ;;  %v1329_v6 = vsel %vm223_vm0, %v1313_v1, 0  ;;  %v1327_v7 = vsel %vm223_vm0, %v1312_v3, 0  ;;  %v979_v33 = vrot.slane %v977_v63, 1 }
 0x106   : > { %v437_v31 = vpop.f32.mrf.mxu1  ;;  %v2481_v0 = vadd.f32 %v548_v55, %v380_v35  ;;  %1368 = vmatpush.bf16.msrb.mxu2 %v1329_v6  ;;  %1340 = vmatpush.bf16.msrb.mxu1 %v1327_v7 }
 0x107   : > { %v980_v23 = vsel %vm469_vm2, %v975_v8, %v979_v33  ;;  %v983_v43 = vor.u32 %v981_v37, %v979_v33  ;;  %v991_v31 = vor.u32 %v989_v56, %v987_v44  ;;  %v2542_v33 = vld [vmem:[%s2240_s30 + $0x14] sm:$0xff] }
 0x109   : > { %v988_v47 = vsel %vm469_vm2, %v983_v43, %v987_v44 }
 0x10b   : > { %v381_v9 = vpop.f32.mrf.mxu3 }
 0x10d   : > { %v550_v13 = vpop.f32.mrf.mxu2  ;;  %v589_v10 = vpop.f32.mrf.mxu0 }
 0x10e   : > { %v2490_v26 = vadd.f32 %v589_v10, %v2396_v52  ;;  %v688_v29 = vpop.f32.mrf.mxu1 }
 0x10f   : > { %v2493_v30 = vadd.f32 %v688_v29, %v2406_v59 }
 0x110   : > { %1927 = vmatmul.msk.bf16.vlgmr.msra.gmra.mxu3 %vm210_vm1, %v980_v23  ;;  %1931 = vmatmul.msk.bf16.vlgmr.msra.gmra.mxu0 %vm210_vm1, %v980_v23 }
 0x111   : > { %1935 = vmatmul.msk.bf16.vlgmr.msra.gmra.mxu1 %vm210_vm1, %v980_v23 }
 0x112   : > { %1952 = vmatmul.msk.bf16.vlgmr.msra.gmra.mxu2 %vm210_vm1, %v2487_v25 }
 0x113   : > { %v561_v17 = vpop.f32.mrf.mxu3 }
 0x114   : > { %v609_v20 = vadd.f32 %v561_v17, %v2393_v49  ;;  %v1134_v17 = vld [vmem:[%s2240_s30 + $0x1c] sm:$0xf] }
 0x115   : > { %v716_v52 = vpop.f32.mrf.mxu2  ;;  %v591_v36 = vpop.f32.mrf.mxu0 }
 0x116   : > { %v2503_v59 = vadd.f32 %v591_v36, %v2408_v60  ;;  %v690_v40 = vpop.f32.mrf.mxu1  ;;  %v2505_v41 = vadd.f32 %v716_v52, %v609_v20  ;;  %v1150_v36 = vunpack.c.l.b16 %v1134_v17  ;;  %v2621_v17 = vld [vmem:[%s2240_s30 + $0x2c] sm:$0xff] }
 0x117   : > { %v2508_v42 = vadd.f32 %v690_v40, %v2415_v4  ;;  %v2041_v4 = vld [vmem:[%s2240_s30 + $0x58] sm:$0x10] }
 0x11b   : > { %v563_v21 = vpop.f32.mrf.mxu3 }
 0x11c   : > { %v612_v49 = vadd.f32 %v563_v21, %v2404_v57  ;;  %v1926_v57 = vor.u32 %v2041_v4, %v1925_v32  ;;  %v2568_v21 = vpack.c.b16 %v1150_v36, %v1150_v36 }
 0x11d   : > { %v718_v45 = vpop.f32.mrf.mxu2  ;;  %v594_v46 = vpop.f32.mrf.mxu0 }
 0x11e   : > { %v2516_v60 = vadd.f32 %v594_v46, %v2418_v5  ;;  %v693_v50 = vpop.f32.mrf.mxu1  ;;  %v2518_v27 = vadd.f32 %v718_v45, %v612_v49  ;;  %v993_v58 = vshll.u32 %v1926_v57, 16  ;;  %v997_v52 = vshrl.u32 %v1926_v57, 16 }
 0x11f   : > { %v2523_v53 = vadd.f32 %v693_v50, %v2429_v14 }
 0x120   : > { %1928 = vmatmul.msk.bf16.gmra.mxu3 %vm210_vm1, %v988_v47  ;;  %1932 = vmatmul.msk.bf16.gmra.mxu0 %vm210_vm1, %v988_v47  ;;  %v995_v1 = vrot.slane %v993_v58, 1 }
 0x121   : > { %1936 = vmatmul.msk.bf16.gmra.mxu1 %vm210_vm1, %v988_v47 }
 0x122   : > { %1953 = vmatmul.msk.bf16.gmra.mxu2 %vm210_vm1, %v2513_v24  ;;  %v996_v8 = vsel %vm469_vm2, %v991_v31, %v995_v1  ;;  %v999_v43 = vor.u32 %v997_v52, %v995_v1  ;;  %v2594_v31 = vld [vmem:[%s2240_s30 + $0x24] sm:$0xff] }
 0x123   : > { %v566_v5 = vpop.f32.mrf.mxu3 }
 0x124   : > { %v615_v54 = vadd.f32 %v566_v5, %v2413_v2 }
 0x125   : > { %v721_v35 = vpop.f32.mrf.mxu2  ;;  %v596_v55 = vpop.f32.mrf.mxu0 }
 0x126   : > { %v2532_v14 = vadd.f32 %v596_v55, %v2432_v18  ;;  %v695_v61 = vpop.f32.mrf.mxu1  ;;  %v2534_v62 = vadd.f32 %v721_v35, %v615_v54 }
 0x127   : > { %v2537_v63 = vadd.f32 %v695_v61, %v2439_v34 }
 0x12b   : > { %v568_v3 = vpop.f32.mrf.mxu3 }
 0x12c   : > { %v618_v6 = vadd.f32 %v568_v3, %v2427_v11 }
 0x12d   : > { %v723_v2 = vpop.f32.mrf.mxu2  ;;  %v599_v7 = vpop.f32.mrf.mxu0 }
 0x12e   : > { %v2545_v18 = vadd.f32 %v599_v7, %v2442_v15  ;;  %v698_v9 = vpop.f32.mrf.mxu1  ;;  %v2547_v13 = vadd.f32 %v723_v2, %v618_v6 }
 0x12f   : > { %v2550_v34 = vadd.f32 %v698_v9, %v2454_v39 }
 0x130   : > { %1929 = vmatmul.msk.bf16.gmra.mxu3 %vm210_vm1, %v996_v8  ;;  %1933 = vmatmul.msk.bf16.gmra.mxu0 %vm210_vm1, %v996_v8 }
 0x131   : > { %1937 = vmatmul.msk.bf16.gmra.mxu1 %vm210_vm1, %v996_v8 }
 0x132   : > { %1954 = vmatmul.msk.bf16.gmra.mxu2 %vm210_vm1, %v2542_v33 }
 0x133   : > { %v571_v11 = vpop.f32.mrf.mxu3 }
 0x134   : > { %v621_v10 = vadd.f32 %v571_v11, %v2437_v12  ;;  %v1314_v12 = vld.sshfl [vmem:[#allocation1 + $0x10] sm:$0xff pattern:$0x73625140] }
 0x135   : > { %v726_v15 = vpop.f32.mrf.mxu2  ;;  %v601_v23 = vpop.f32.mrf.mxu0 }
 0x136   : > { %v2559_v29 = vadd.f32 %v601_v23, %v2457_v19  ;;  %v700_v16 = vpop.f32.mrf.mxu1  ;;  %v2561_v39 = vadd.f32 %v726_v15, %v621_v10  ;;  %v1331_v19 = vsel %vm223_vm0, %v1314_v12, 0 }
 0x137   : > { %v2565_v20 = vadd.f32 %v700_v16, %v2465_v51  ;;  %1396 = vmatpush.bf16.msra.mxu3 %v1331_v19 }
 0x13b   : > { %v573_v37 = vpop.f32.mrf.mxu3 }
 0x13c   : > { %v624_v22 = vadd.f32 %v573_v37, %v2452_v38  ;;  %v1989_v38 = vld [vmem:[%s2951_s1 + $0x30] sm:$0x3f] }
 0x13d   : > { %v728_v40 = vpop.f32.mrf.mxu2  ;;  %v604_v44 = vpop.f32.mrf.mxu0  ;;  %1500 = vst [vmem:[#allocation1] ss:$4 sm:$0xff] %v1989_v38 }
 0x13e   : > { %v2572_v49 = vadd.f32 %v604_v44, %v2468_v28  ;;  %v703_v45 = vpop.f32.mrf.mxu1  ;;  %v2574_v46 = vadd.f32 %v728_v40, %v624_v22 }
 0x13f   : > { %v2577_v51 = vadd.f32 %v703_v45, %v2481_v0  ;;  %v2650_v45 = vld [vmem:[%s2240_s30 + $0x34] sm:$0xff] }
 0x140   : > { %1930 = vmatmul.msk.bf16.gmra.mxu3 %vm210_vm1, %v999_v43  ;;  %1934 = vmatmul.msk.bf16.gmra.mxu0 %vm210_vm1, %v999_v43 }
 0x141   : > { %1938 = vmatmul.msk.bf16.gmra.mxu1 %vm210_vm1, %v999_v43 }
 0x142   : > { %1955 = vmatmul.msk.bf16.gmra.mxu2 %vm210_vm1, %v2568_v21 }
 0x143   : > { %v576_v28 = vpop.f32.mrf.mxu3 }
 0x144   : > { %v627_v47 = vadd.f32 %v576_v28, %v2463_v48  ;;  %v1503_v57 = vld.sshfl [vmem:[#allocation1 + $0x10] sm:$0xff pattern:$0x73625140]  ;;  %v1501_v5 = vld.sshfl [vmem:[#allocation1] sm:$0xff pattern:$0x73625140] }
 0x145   : > { %v731_v50 = vpop.f32.mrf.mxu2  ;;  %v606_v0 = vpop.f32.mrf.mxu0  ;;  %v1520_v54 = vsel %vm223_vm0, %v1503_v57, 0  ;;  %v1516_v35 = vsel %vm223_vm0, %v1501_v5, 0  ;;  %v1502_v55 = vld.sshfl [vmem:[#allocation1 + $0x8] sm:$0xff pattern:$0x73625140] }
 0x146   : > { %v705_v32 = vpop.f32.mrf.mxu1  ;;  %v2588_v4 = vadd.f32 %v731_v50, %v627_v47  ;;  %1585 = vmatpush.bf16.msra.mxu2 %v1520_v54  ;;  %1529 = vmatpush.bf16.msra.mxu0 %v1516_v35  ;;  %v1518_v56 = vsel %vm223_vm0, %v1502_v55, 0 }
 0x147   : > { %1557 = vmatpush.bf16.msra.mxu1 %v1518_v56  ;;  %v1289_v32 = vld [vmem:[%s2240_s30 + $0x3c] sm:$0xf]  ;;  %v2048_v56 = vld [vmem:[%s2240_s30 + $0x4] sm:$0xff] }
 0x148   : > { %v1305_v57 = vunpack.c.l.b16 %v1289_v32 }
 0x14b   : > { %v578_v58 = vpop.f32.mrf.mxu3 }
 0x14d   : > { %v733_v48 = vpop.f32.mrf.mxu2  ;;  %v843_v61 = vpop.f32.mrf.mxu0 }
 0x14e   : > { %v2597_v1 = vadd.f32 %v843_v61, %v2493_v30  ;;  %v871_v3 = vpop.f32.mrf.mxu1 }
 0x14f   : > { %v2600_v6 = vadd.f32 %v871_v3, %v2505_v41 }
 0x150   : > { %1956 = vmatmul.msk.bf16.vlgmr.msrb.gmra.mxu3 %vm210_vm1, %v2487_v25  ;;  %1960 = vmatmul.msk.bf16.vlgmr.msrb.gmra.mxu0 %vm210_vm1, %v2487_v25 }
 0x151   : > { %1977 = vmatmul.msk.bf16.vlgmr.msrb.gmra.mxu1 %vm210_vm1, %v2594_v31 }
 0x152   : > { %1981 = vmatmul.msk.bf16.vlgmr.msrb.gmra.mxu2 %vm210_vm1, %v2594_v31 }
 0x153   : > { %v744_v2 = vpop.f32.mrf.mxu3 }
 0x154   : > { %v765_v30 = vadd.f32 %v744_v2, %v2490_v26 }
 0x155   : > { %v899_v7 = vpop.f32.mrf.mxu2  ;;  %v845_v8 = vpop.f32.mrf.mxu0 }
 0x156   : > { %v2612_v41 = vadd.f32 %v845_v8, %v2508_v42  ;;  %v873_v9 = vpop.f32.mrf.mxu1  ;;  %v2614_v11 = vadd.f32 %v899_v7, %v765_v30  ;;  %v1469_v30 = vshrl.u32 %v2048_v56, 16 }
 0x157   : > { %v2617_v10 = vadd.f32 %v873_v9, %v2518_v27 }
 0x15b   : > { %v746_v25 = vpop.f32.mrf.mxu3 }
 0x15c   : > { %v768_v15 = vadd.f32 %v746_v25, %v2503_v59 }
 0x15d   : > { %v901_v23 = vpop.f32.mrf.mxu2  ;;  %v848_v16 = vpop.f32.mrf.mxu0 }
 0x15e   : > { %v2624_v26 = vadd.f32 %v848_v16, %v2523_v53  ;;  %v876_v52 = vpop.f32.mrf.mxu1  ;;  %v2626_v36 = vadd.f32 %v901_v23, %v768_v15 }
 0x15f   : > { %v2629_v42 = vadd.f32 %v876_v52, %v2534_v62 }
 0x160   : > { %1957 = vmatmul.msk.bf16.gmra.mxu3 %vm210_vm1, %v2513_v24  ;;  %1961 = vmatmul.msk.bf16.gmra.mxu0 %vm210_vm1, %v2513_v24 }
 0x161   : > { %1978 = vmatmul.msk.bf16.gmra.mxu1 %vm210_vm1, %v2621_v17 }
 0x162   : > { %1982 = vmatmul.msk.bf16.gmra.mxu2 %vm210_vm1, %v2621_v17 }
 0x163   : > { %v749_v59 = vpop.f32.mrf.mxu3 }
 0x164   : > { %v771_v27 = vadd.f32 %v749_v59, %v2516_v60 }
 0x165   : > { %v904_v53 = vpop.f32.mrf.mxu2  ;;  %v850_v37 = vpop.f32.mrf.mxu0 }
 0x166   : > { %v2641_v62 = vadd.f32 %v850_v37, %v2537_v63  ;;  %v878_v22 = vpop.f32.mrf.mxu1  ;;  %v2643_v40 = vadd.f32 %v904_v53, %v771_v27  ;;  %v2050_v37 = vld [vmem:[%s2240_s30 + $0x14] sm:$0xff] }
 0x167   : > { %v2646_v43 = vadd.f32 %v878_v22, %v2547_v13 }
 0x16b   : > { %v751_v24 = vpop.f32.mrf.mxu3 }
 0x16c   : > { %v774_v12 = vadd.f32 %v751_v24, %v2532_v14 }
 0x16d   : > { %v906_v44 = vpop.f32.mrf.mxu2  ;;  %v853_v19 = vpop.f32.mrf.mxu0 }
 0x16e   : > { %v2653_v60 = vadd.f32 %v853_v19, %v2550_v34  ;;  %v881_v38 = vpop.f32.mrf.mxu1  ;;  %v2655_v63 = vadd.f32 %v906_v44, %v774_v12  ;;  %v1484_v19 = vshll.u32 %v2050_v37, 16 }
 0x16f   : > { %v2658_v28 = vadd.f32 %v881_v38, %v2561_v39 }
 0x170   : > { %1958 = vmatmul.msk.bf16.gmra.mxu3 %vm210_vm1, %v2542_v33  ;;  %1962 = vmatmul.msk.bf16.gmra.mxu0 %vm210_vm1, %v2542_v33 }
 0x171   : > { %1979 = vmatmul.msk.bf16.gmra.mxu1 %vm210_vm1, %v2650_v45 }
 0x172   : > { %1983 = vmatmul.msk.bf16.gmra.mxu2 %vm210_vm1, %v2650_v45 }
 0x173   : > { %v754_v14 = vpop.f32.mrf.mxu3 }
 0x174   : > { %v777_v13 = vadd.f32 %v754_v14, %v2545_v18  ;;  %v2679_v18 = vpack.c.b16 %v1305_v57, %v1305_v57 }
 0x175   : > { %v909_v34 = vpop.f32.mrf.mxu2  ;;  %v855_v47 = vpop.f32.mrf.mxu0 }
 0x176   : > { %v2670_v39 = vadd.f32 %v855_v47, %v2565_v20  ;;  %v883_v50 = vpop.f32.mrf.mxu1  ;;  %v2672_v0 = vadd.f32 %v909_v34, %v777_v13  ;;  %v1486_v34 = vrot.slane %v1484_v19, 1 }
 0x177   : > { %v2676_v33 = vadd.f32 %v883_v50, %v2574_v46  ;;  %v1471_v46 = vshll.u32 %v2048_v56, 16 }
 0x179   : > { %v1473_v7 = vrot.slane %v1471_v46, 1  ;;  %v1488_v46 = vshrl.u32 %v2050_v37, 16 }
 0x17b   : > { %v756_v5 = vpop.f32.mrf.mxu3 }
 0x17c   : > { %v780_v54 = vadd.f32 %v756_v5, %v2559_v29  ;;  %v2049_v29 = vld [vmem:[%s2240_s30 + $0xc] sm:$0xff] }
 0x17d   : > { %v911_v35 = vpop.f32.mrf.mxu2  ;;  %v858_v55 = vpop.f32.mrf.mxu0  ;;  %v1476_v8 = vshll.u32 %v2049_v29, 16  ;;  %v1480_v44 = vshrl.u32 %v2049_v29, 16 }
 0x17e   : > { %v2683_v20 = vadd.f32 %v858_v55, %v2577_v51  ;;  %v886_v58 = vpop.f32.mrf.mxu1  ;;  %v2685_v48 = vadd.f32 %v911_v35, %v780_v54  ;;  %v2004_v35 = vld [vmem:[%s2240_s30 + $0x1c] sm:$0xf]  ;;  %v2051_v55 = vld [vmem:[%s2240_s30 + $0x1c] sm:$0x10] }
 0x17f   : > { %v2688_v61 = vadd.f32 %v886_v58, %v2588_v4  ;;  %v1478_v15 = vrot.slane %v1476_v8, 1 }
 0x180   : > { %1959 = vmatmul.msk.bf16.gmra.mxu3 %vm210_vm1, %v2568_v21  ;;  %1963 = vmatmul.msk.bf16.gmra.mxu0 %vm210_vm1, %v2568_v21  ;;  %v1474_v21 = vor.u32 %v1473_v7, %v1469_v30 }
 0x181   : > { %1980 = vmatmul.msk.bf16.gmra.mxu1 %vm210_vm1, %v2679_v18  ;;  %v1482_v13 = vor.u32 %v1480_v44, %v1478_v15 }
 0x182   : > { %1984 = vmatmul.msk.bf16.gmra.mxu2 %vm210_vm1, %v2679_v18  ;;  %v1479_v59 = vsel %vm469_vm2, %v1474_v21, %v1478_v15 }
 0x183   : > { %v759_v51 = vpop.f32.mrf.mxu3  ;;  %v1487_v57 = vsel %vm469_vm2, %v1482_v13, %v1486_v34 }
 0x184   : > { %v783_v3 = vadd.f32 %v759_v51, %v2572_v49 }
 0x185   : > { %v914_v2 = vpop.f32.mrf.mxu2  ;;  %v860_v4 = vpop.f32.mrf.mxu0 }
 0x186   : > { %v888_v9 = vpop.f32.mrf.mxu1  ;;  %v2700_v25 = vadd.f32 %v914_v2, %v783_v3  ;;  %v1490_v4 = vor.u32 %v1488_v46, %v1486_v34 }
 0x18b   : > { %v761_v23 = vpop.f32.mrf.mxu3 }
 0x18d   : > { %v916_v16 = vpop.f32.mrf.mxu2  ;;  %v1060_v52 = vpop.f32.mrf.mxu0 }
 0x18e   : > { %v2704_v27 = vadd.f32 %v1060_v52, %v2600_v6  ;;  %v1088_v49 = vpop.f32.mrf.mxu1 }
 0x18f   : > { %v2707_v53 = vadd.f32 %v1088_v49, %v2614_v11 }
 0x190   : > { %1985 = vmatmul.msk.bf16.vlgmr.msra.gmra.mxu3 %vm210_vm1, %v2594_v31  ;;  %2006 = vmatmul.msk.bf16.vlgmr.msra.gmra.mxu0 %vm210_vm1, %v1479_v59 }
 0x191   : > { %2010 = vmatmul.msk.bf16.vlgmr.msra.gmra.mxu1 %vm210_vm1, %v1479_v59 }
 0x192   : > { %2014 = vmatmul.msk.bf16.vlgmr.msra.gmra.mxu2 %vm210_vm1, %v1479_v59 }
 0x193   : > { %v1032_v22 = vpop.f32.mrf.mxu3 }
 0x194   : > { %v1107_v24 = vadd.f32 %v1032_v22, %v2597_v1 }
 0x195   : > { %v1187_v12 = vpop.f32.mrf.mxu2  ;;  %v1062_v6 = vpop.f32.mrf.mxu0 }
 0x196   : > { %v2717_v11 = vadd.f32 %v1062_v6, %v2617_v10  ;;  %v1090_v31 = vpop.f32.mrf.mxu1  ;;  %v2719_v38 = vadd.f32 %v1187_v12, %v1107_v24 }
 0x197   : > { %v2722_v14 = vadd.f32 %v1090_v31, %v2626_v36 }
 0x19b   : > { %v1034_v47 = vpop.f32.mrf.mxu3 }
 0x19c   : > { %v1110_v1 = vadd.f32 %v1034_v47, %v2612_v41  ;;  %v2005_v41 = vor.u32 %v2051_v55, %v2004_v35 }
 0x19d   : > { %v1189_v50 = vpop.f32.mrf.mxu2  ;;  %v1065_v32 = vpop.f32.mrf.mxu0 }
 0x19e   : > { %v2727_v5 = vadd.f32 %v1065_v32, %v2629_v42  ;;  %v1093_v10 = vpop.f32.mrf.mxu1  ;;  %v2729_v54 = vadd.f32 %v1189_v50, %v1110_v1  ;;  %v1492_v51 = vshll.u32 %v2005_v41, 16 }
 0x19f   : > { %v2734_v36 = vadd.f32 %v1093_v10, %v2643_v40 }
 0x1a0   : > { %1986 = vmatmul.msk.bf16.gmra.mxu3 %vm210_vm1, %v2621_v17  ;;  %2007 = vmatmul.msk.bf16.gmra.mxu0 %vm210_vm1, %v1487_v57  ;;  %v1494_v30 = vrot.slane %v1492_v51, 1 }
 0x1a1   : > { %2011 = vmatmul.msk.bf16.gmra.mxu1 %vm210_vm1, %v1487_v57 }
 0x1a2   : > { %2015 = vmatmul.msk.bf16.gmra.mxu2 %vm210_vm1, %v1487_v57 }
 0x1a3   : > { %v1037_v42 = vpop.f32.mrf.mxu3 }
 0x1a4   : > { %v1113_v56 = vadd.f32 %v1037_v42, %v2624_v26  ;;  %v1495_v26 = vsel %vm469_vm2, %v1490_v4, %v1494_v30 }
 0x1a5   : > { %v1192_v58 = vpop.f32.mrf.mxu2  ;;  %v1067_v29 = vpop.f32.mrf.mxu0 }
 0x1a6   : > { %v2743_v40 = vadd.f32 %v1067_v29, %v2646_v43  ;;  %v1095_v3 = vpop.f32.mrf.mxu1  ;;  %v2745_v2 = vadd.f32 %v1192_v58, %v1113_v56 }
 0x1a7   : > { %v1118_v17 = vadd.f32 %v1095_v3, %v2655_v63 }
 0x1ab   : > { %v1039_v7 = vpop.f32.mrf.mxu3 }
 0x1ac   : > { %v1116_v8 = vadd.f32 %v1039_v7, %v2641_v62 }
 0x1ad   : > { %v1194_v9 = vpop.f32.mrf.mxu2  ;;  %v1070_v21 = vpop.f32.mrf.mxu0 }
 0x1ae   : > { %v2751_v15 = vadd.f32 %v1070_v21, %v2658_v28  ;;  %v1098_v23 = vpop.f32.mrf.mxu1  ;;  %v2753_v43 = vadd.f32 %v1194_v9, %v1116_v8 }
 0x1af   : > { %v1121_v16 = vadd.f32 %v1098_v23, %v2672_v0 }
 0x1b0   : > { %1987 = vmatmul.msk.bf16.gmra.mxu3 %vm210_vm1, %v2650_v45  ;;  %2008 = vmatmul.msk.bf16.gmra.mxu0 %vm210_vm1, %v1495_v26  ;;  %v1496_v45 = vshrl.u32 %v2005_v41, 16 }
 0x1b1   : > { %2012 = vmatmul.msk.bf16.gmra.mxu1 %vm210_vm1, %v1495_v26 }
 0x1b2   : > { %2016 = vmatmul.msk.bf16.gmra.mxu2 %vm210_vm1, %v1495_v26  ;;  %v1498_v6 = vor.u32 %v1496_v45, %v1494_v30 }
 0x1b3   : > { %v1042_v62 = vpop.f32.mrf.mxu3 }
 0x1b4   : > { %v1119_v63 = vadd.f32 %v1042_v62, %v2653_v60 }
 0x1b5   : > { %v1197_v52 = vpop.f32.mrf.mxu2  ;;  %v1072_v28 = vpop.f32.mrf.mxu0 }
 0x1b6   : > { %v2763_v59 = vadd.f32 %v1072_v28, %v2676_v33  ;;  %v1100_v49 = vpop.f32.mrf.mxu1  ;;  %v2765_v37 = vadd.f32 %v1197_v52, %v1119_v63 }
 0x1b7   : > { %v1124_v0 = vadd.f32 %v1100_v49, %v2685_v48 }
 0x1bb   : > { %v1044_v22 = vpop.f32.mrf.mxu3 }
 0x1bc   : > { %v1122_v24 = vadd.f32 %v1044_v22, %v2670_v39 }
 0x1bd   : > { %v1199_v12 = vpop.f32.mrf.mxu2  ;;  %v1075_v44 = vpop.f32.mrf.mxu0 }
 0x1be   : > { %v2770_v19 = vadd.f32 %v1075_v44, %v2688_v61  ;;  %v1103_v60 = vpop.f32.mrf.mxu1  ;;  %v2772_v31 = vadd.f32 %v1199_v12, %v1122_v24  ;;  %v1627_v12 = vld [vmem:[%s2952_s2] sm:$0x7] }
 0x1bf   : > { %v1127_v33 = vadd.f32 %v1103_v60, %v2700_v25 }
 0x1c0   : > { %1988 = vmatmul.msk.bf16.gmra.mxu3 %vm210_vm1, %v2679_v18  ;;  %2009 = vmatmul.msk.bf16.gmra.mxu0 %vm210_vm1, %v1498_v6 }
 0x1c1   : > { %2013 = vmatmul.msk.bf16.gmra.mxu1 %vm210_vm1, %v1498_v6 }
 0x1c2   : > { %2017 = vmatmul.msk.bf16.gmra.mxu2 %vm210_vm1, %v1498_v6 }
 0x1c3   : > { %v1047_v39 = vpop.f32.mrf.mxu3 }
 0x1c4   : > { %v1125_v48 = vadd.f32 %v1047_v39, %v2683_v20 }
 0x1c5   : > { %v1202_v13 = vpop.f32.mrf.mxu2  ;;  %v1077_v61 = vpop.f32.mrf.mxu0 }
 0x1c6   : > { %v1105_v34 = vpop.f32.mrf.mxu1  ;;  %v2781_v47 = vadd.f32 %v1202_v13, %v1125_v48  ;;  %v2836_v13 = vperm.slane %v1627_v12, 1 }
 0x1cb   : > { %v1049_v1 = vpop.f32.mrf.mxu3 }
 0x1cd   : > { %v1204_v50 = vpop.f32.mrf.mxu2  ;;  %v1243_v25 = vpop.f32.mrf.mxu0 }
 0x1ce   : > { %v1264_v32 = vadd.f32 %v1243_v25, %v2707_v53  ;;  %v1342_v18 = vpop.f32.mrf.mxu1 }
 0x1cf   : > { %v1417_v44 = vadd.f32 %v1342_v18, %v2719_v38 }
 0x1d3   : > { %v1215_v57 = vpop.f32.mrf.mxu3 }
 0x1d5   : > { %v1370_v10 = vpop.f32.mrf.mxu2  ;;  %v1245_v35 = vpop.f32.mrf.mxu0 }
 0x1d6   : > { %v2785_v55 = vadd.f32 %v1245_v35, %v2722_v14  ;;  %v1344_v41 = vpop.f32.mrf.mxu1 }
 0x1d7   : > { %v1420_v35 = vadd.f32 %v1344_v41, %v2729_v54 }
 0x1db   : > { %v1217_v42 = vpop.f32.mrf.mxu3 }
 0x1dc   : > { %v1266_v50 = vadd.f32 %v1217_v42, %v2717_v11 }
 0x1dd   : > { %v1372_v20 = vpop.f32.mrf.mxu2  ;;  %v1248_v56 = vpop.f32.mrf.mxu0 }
 0x1de   : > { %v2788_v58 = vadd.f32 %v1248_v56, %v2734_v36  ;;  %v2790_v29 = vpop.f32.mrf.mxu1 }
 0x1e3   : > { %v1220_v46 = vpop.f32.mrf.mxu3 }
 0x1e5   : > { %v2792_v51 = vpop.f32.mrf.mxu2  ;;  %v1250_v53 = vpop.f32.mrf.mxu0 }
 0x1e6   : > { %v2794_v3 = vadd.f32 %v1250_v53, %v1118_v17  ;;  %v2796_v4 = vpop.f32.mrf.mxu1  ;;  %v2845_v53 = vperm.slane %v1627_v12, 2 }
 0x1eb   : > { %v2798_v30 = vpop.f32.mrf.mxu3 }
 0x1ed   : > { %v2800_v14 = vpop.f32.mrf.mxu2  ;;  %v1253_v7 = vpop.f32.mrf.mxu0 }
 0x1ee   : > { %v2802_v8 = vadd.f32 %v1253_v7, %v1121_v16  ;;  %v2804_v9 = vpop.f32.mrf.mxu1  ;;  %v1421_v7 = vadd.f32 %v1372_v20, %v1266_v50 }
 0x1f3   : > { %v2806_v36 = vpop.f32.mrf.mxu3 }
 0x1f5   : > { %v2808_v21 = vpop.f32.mrf.mxu2  ;;  %v1255_v26 = vpop.f32.mrf.mxu0 }
 0x1f6   : > { %v2810_v23 = vadd.f32 %v1255_v26, %v1124_v0  ;;  %v2812_v17 = vpop.f32.mrf.mxu1  ;;  %v1263_v0 = vadd.f32 %v1215_v57, %v2704_v27 }
 0x1f8   : > { %v1418_v39 = vadd.f32 %v1370_v10, %v1263_v0 }
 0x1fb   : > { %v2814_v62 = vpop.f32.mrf.mxu3 }
 0x1fd   : > { %v2816_v63 = vpop.f32.mrf.mxu2  ;;  %v1258_v52 = vpop.f32.mrf.mxu0 }
 0x1fe   : > { %v2818_v16 = vadd.f32 %v1258_v52, %v1127_v33  ;;  %v2820_v28 = vpop.f32.mrf.mxu1  ;;  %v2832_v33 = vperm.slane %v1627_v12, 0 }
 0x203   : > { %v2822_v49 = vpop.f32.mrf.mxu3 }
 0x205   : > { %v2824_v45 = vpop.f32.mrf.mxu2  ;;  %v1260_v22 = vpop.f32.mrf.mxu0 }
 0x206   : > { %v1359_v24 = vpop.f32.mrf.mxu1 }
 0x207   : > { %v1269_v24 = vadd.f32 %v1220_v46, %v2727_v5 }
 0x20b   : > { %v1232_v6 = vpop.f32.mrf.mxu3 }
 0x20d   : > { %v1387_v60 = vpop.f32.mrf.mxu2  ;;  %v1531_v48 = vpop.f32.mrf.mxu0 }
 0x20e   : > { %v1606_v61 = vadd.f32 %v1531_v48, %v1417_v44  ;;  %v1559_v34 = vpop.f32.mrf.mxu1  ;;  %v1423_v44 = vadd.f32 %v2790_v29, %v2745_v2  ;;  %v1424_v48 = vadd.f32 %v2792_v51, %v1269_v24 }
 0x20f   : > { %v1607_v27 = vadd.f32 %v1559_v34, %v1418_v39 }
 0x210   : > { %v1635_v1 = vadd.f32 %v2832_v33, %v1606_v61 }
 0x211   : > { %v1636_v25 = vadd.f32 %v2836_v13, %v1607_v27 }
 0x212   : > { %v1656_v57 = vmax.f32 %v1635_v1, 0.0 }
 0x213   : > { %v1657_v38 = vmax.f32 %v1636_v25, 0.0  ;;  %v1398_v18 = vpop.f32.mrf.mxu3 }
 0x214   : > { %1677 = vst [vmem:[%s2842_s6] sm:$0xff] %v1656_v57  ;;  %v1419_v10 = vadd.f32 %v1398_v18, %v1264_v32 }
 0x215   : > { %v1587_v56 = vpop.f32.mrf.mxu2  ;;  %1678 = vst [vmem:[%s2842_s6 + $0x8] sm:$0xff] %v1657_v38  ;;  %v1533_v11 = vpop.f32.mrf.mxu0  ;;  %v1426_v38 = vadd.f32 %v2796_v4, %v2753_v43 }
 0x216   : > { %v1609_v42 = vadd.f32 %v1533_v11, %v1420_v35  ;;  %v1561_v26 = vpop.f32.mrf.mxu1  ;;  %v1608_v52 = vadd.f32 %v1587_v56, %v1419_v10 }
 0x217   : > { %v1610_v22 = vadd.f32 %v1561_v26, %v1421_v7 }
 0x218   : > { %v1638_v54 = vadd.f32 %v2832_v33, %v1609_v42  ;;  %v1637_v41 = vadd.f32 %v2845_v53, %v1608_v52 }
 0x219   : > { %v1639_v32 = vadd.f32 %v2836_v13, %v1610_v22 }
 0x21a   : > { %v1659_v0 = vmax.f32 %v1638_v54, 0.0  ;;  %v1658_v12 = vmax.f32 %v1637_v41, 0.0  ;;  %v1429_v54 = vadd.f32 %v2804_v9, %v2765_v37 }
 0x21b   : > { %v1660_v20 = vmax.f32 %v1639_v32, 0.0  ;;  %v1400_v6 = vpop.f32.mrf.mxu3 }
 0x21c   : > { %1680 = vst [vmem:[%s2842_s6 + $0x18] sm:$0xff] %v1659_v0  ;;  %v1422_v60 = vadd.f32 %v1400_v6, %v2785_v55  ;;  %v1272_v55 = vadd.f32 %v2798_v30, %v2743_v40 }
 0x21d   : > { %v1589_v39 = vpop.f32.mrf.mxu2  ;;  %1681 = vst [vmem:[%s2842_s6 + $0x20] sm:$0xff] %v1660_v20  ;;  %v1536_v61 = vpop.f32.mrf.mxu0 }
 0x21e   : > { %1679 = vst [vmem:[%s2842_s6 + $0x10] sm:$0xff] %v1658_v12  ;;  %v1612_v5 = vadd.f32 %v1536_v61, %v1423_v44  ;;  %v1564_v46 = vpop.f32.mrf.mxu1  ;;  %v1611_v34 = vadd.f32 %v1589_v39, %v1422_v60  ;;  %v1427_v10 = vadd.f32 %v2800_v14, %v1272_v55 }
 0x21f   : > { %v1613_v27 = vadd.f32 %v1564_v46, %v1424_v48  ;;  %v1432_v48 = vadd.f32 %v2812_v17, %v2772_v31 }
 0x220   : > { %v1641_v1 = vadd.f32 %v2832_v33, %v1612_v5  ;;  %v1640_v2 = vadd.f32 %v2845_v53, %v1611_v34 }
 0x221   : > { %v1642_v29 = vadd.f32 %v2836_v13, %v1613_v27 }
 0x222   : > { %v1662_v51 = vmax.f32 %v1641_v1, 0.0  ;;  %v1661_v50 = vmax.f32 %v1640_v2, 0.0 }
 0x223   : > { %v1663_v25 = vmax.f32 %v1642_v29, 0.0  ;;  %v1403_v57 = vpop.f32.mrf.mxu3 }
 0x224   : > { %1683 = vst [vmem:[%s2842_s6 + $0x30] sm:$0xff] %v1662_v51  ;;  %v1425_v18 = vadd.f32 %v1403_v57, %v2788_v58  ;;  %v1275_v58 = vadd.f32 %v2806_v36, %v2751_v15 }
 0x225   : > { %v1592_v35 = vpop.f32.mrf.mxu2  ;;  %1684 = vst [vmem:[%s2842_s6 + $0x38] sm:$0xff] %v1663_v25  ;;  %v1538_v56 = vpop.f32.mrf.mxu0 }
 0x226   : > { %1682 = vst [vmem:[%s2842_s6 + $0x28] sm:$0xff] %v1661_v50  ;;  %v1615_v40 = vadd.f32 %v1538_v56, %v1426_v38  ;;  %v1566_v30 = vpop.f32.mrf.mxu1  ;;  %v1614_v7 = vadd.f32 %v1592_v35, %v1425_v18  ;;  %v1430_v32 = vadd.f32 %v2808_v21, %v1275_v58  ;;  %v1435_v50 = vadd.f32 %v2820_v28, %v2781_v47 }
 0x227   : > { %v1616_v11 = vadd.f32 %v1566_v30, %v1427_v10 }
 0x228   : > { %v1644_v42 = vadd.f32 %v2832_v33, %v1615_v40  ;;  %v1643_v43 = vadd.f32 %v2845_v53, %v1614_v7 }
 0x229   : > { %v1645_v4 = vadd.f32 %v2836_v13, %v1616_v11 }
 0x22a   : > { %v1665_v14 = vmax.f32 %v1644_v42, 0.0  ;;  %v1664_v26 = vmax.f32 %v1643_v43, 0.0 }
 0x22b   : > { %v1666_v52 = vmax.f32 %v1645_v4, 0.0  ;;  %v1405_v22 = vpop.f32.mrf.mxu3 }
 0x22c   : > { %1686 = vst [vmem:[%s2842_s6 + $0x48] sm:$0xff] %v1665_v14  ;;  %v1428_v41 = vadd.f32 %v1405_v22, %v2794_v3  ;;  %v1278_v3 = vadd.f32 %v2814_v62, %v2763_v59 }
 0x22d   : > { %v1594_v24 = vpop.f32.mrf.mxu2  ;;  %1687 = vst [vmem:[%s2842_s6 + $0x50] sm:$0xff] %v1666_v52  ;;  %v1541_v0 = vpop.f32.mrf.mxu0 }
 0x22e   : > { %1685 = vst [vmem:[%s2842_s6 + $0x40] sm:$0xff] %v1664_v26  ;;  %v1618_v15 = vadd.f32 %v1541_v0, %v1429_v54  ;;  %v1569_v36 = vpop.f32.mrf.mxu1  ;;  %v1617_v12 = vadd.f32 %v1594_v24, %v1428_v41  ;;  %v1433_v46 = vadd.f32 %v2816_v63, %v1278_v3 }
 0x22f   : > { %v1619_v20 = vadd.f32 %v1569_v36, %v1430_v32 }
 0x230   : > { %v1647_v6 = vadd.f32 %v2832_v33, %v1618_v15  ;;  %v1646_v37 = vadd.f32 %v2845_v53, %v1617_v12 }
 0x231   : > { %v1648_v9 = vadd.f32 %v2836_v13, %v1619_v20 }
 0x232   : > { %v1668_v21 = vmax.f32 %v1647_v6, 0.0  ;;  %v1667_v44 = vmax.f32 %v1646_v37, 0.0 }
 0x233   : > { %v1669_v60 = vmax.f32 %v1648_v9, 0.0  ;;  %v1408_v39 = vpop.f32.mrf.mxu3 }
 0x234   : > { %1689 = vst [vmem:[%s2842_s6 + $0x60] sm:$0xff] %v1668_v21  ;;  %v1431_v61 = vadd.f32 %v1408_v39, %v2802_v8  ;;  %v1281_v8 = vadd.f32 %v2822_v49, %v2770_v19 }
 0x235   : > { %v1597_v5 = vpop.f32.mrf.mxu2  ;;  %1690 = vst [vmem:[%s2842_s6 + $0x68] sm:$0xff] %v1669_v60  ;;  %v1543_v34 = vpop.f32.mrf.mxu0 }
 0x236   : > { %1688 = vst [vmem:[%s2842_s6 + $0x58] sm:$0xff] %v1667_v44  ;;  %v1621_v59 = vadd.f32 %v1543_v34, %v1432_v48  ;;  %v1571_v62 = vpop.f32.mrf.mxu1  ;;  %v1620_v27 = vadd.f32 %v1597_v5, %v1431_v61  ;;  %v1436_v38 = vadd.f32 %v2824_v45, %v1281_v8 }
 0x237   : > { %v1622_v1 = vadd.f32 %v1571_v62, %v1433_v46 }
 0x238   : > { %v1650_v2 = vadd.f32 %v2832_v33, %v1621_v59  ;;  %v1649_v31 = vadd.f32 %v2845_v53, %v1620_v27 }
 0x239   : > { %v1651_v17 = vadd.f32 %v2836_v13, %v1622_v1 }
 0x23a   : > { %v1671_v63 = vmax.f32 %v1650_v2, 0.0  ;;  %v1670_v55 = vmax.f32 %v1649_v31, 0.0 }
 0x23b   : > { %v1672_v29 = vmax.f32 %v1651_v17, 0.0  ;;  %v1410_v51 = vpop.f32.mrf.mxu3 }
 0x23c   : > { %1692 = vst [vmem:[%s2842_s6 + $0x78] sm:$0xff] %v1671_v63  ;;  %v1434_v25 = vadd.f32 %v1410_v51, %v2810_v23 }
 0x23d   : > { %v1599_v57 = vpop.f32.mrf.mxu2  ;;  %1693 = vst [vmem:[%s2842_s6 + $0x80] sm:$0xff] %v1672_v29  ;;  %v1546_v18 = vpop.f32.mrf.mxu0 }
 0x23e   : > { %1691 = vst [vmem:[%s2842_s6 + $0x70] sm:$0xff] %v1670_v55  ;;  %v1624_v19 = vadd.f32 %v1546_v18, %v1435_v50  ;;  %v1574_v49 = vpop.f32.mrf.mxu1  ;;  %v1623_v35 = vadd.f32 %v1599_v57, %v1434_v25 }
 0x23f   : > { %v1625_v10 = vadd.f32 %v1574_v49, %v1436_v38 }
 0x240   : > { %v1653_v56 = vadd.f32 %v2832_v33, %v1624_v19  ;;  %v1652_v47 = vadd.f32 %v2845_v53, %v1623_v35 }
 0x241   : > { %v1654_v23 = vadd.f32 %v2836_v13, %v1625_v10 }
 0x242   : > { %v1674_v28 = vmax.f32 %v1653_v56, 0.0  ;;  %v1673_v45 = vmax.f32 %v1652_v47, 0.0 }
 0x243   : > { %v1675_v40 = vmax.f32 %v1654_v23, 0.0  ;;  %v1413_v30 = vpop.f32.mrf.mxu3 }
 0x244   : > { %1695 = vst [vmem:[%s2842_s6 + $0x90] sm:$0xff] %v1674_v28  ;;  %v1437_v7 = vadd.f32 %v1413_v30, %v2818_v16 }
 0x245   : > { %v1602_v11 = vpop.f32.mrf.mxu2  ;;  %1696 = vst [vmem:[%s2842_s6 + $0x98] sm:$0xff] %v1675_v40  ;;  %v1548_v33 = vpop.f32.mrf.mxu0 }
 0x246   : > { %1694 = vst [vmem:[%s2842_s6 + $0x88] sm:$0xff] %v1673_v45  ;;  %v1626_v42 = vadd.f32 %v1602_v11, %v1437_v7  ;;  %v1576_v13 = vpop.f32.mrf.mxu1 }
 0x248   : > { %v1655_v43 = vadd.f32 %v2845_v53, %v1626_v42 }
 0x24a   : > { %v1676_v58 = vmax.f32 %v1655_v43, 0.0 }
 0x24b   : > { %v1415_v4 = vpop.f32.mrf.mxu3 }
 0x24c   : > { %1697 = vst [vmem:[%s2842_s6 + $0xa0] sm:$0xff] %v1676_v58 }
 0x24d   : > { %v1604_v14 = vpop.f32.mrf.mxu2 }
 0x24e   : > { %2125 = shalt.err (!%p2122_p3)
}
 0x24f   : > { %s2162_s29 = smov 384   ;;  %s2163_s30 = smov 24  }
 0x250   : > { %2057 = dma.vmem_to_hbm [thread:$0]  (%p2222_p5), %s1712_s16, 2688, %s1714_s11, %s1699_s17, %s2162_s29, %s2162_s29, %s2163_s30  }
 0x251 PF: > { %p2063_p4 = scmp.ge.s32.totalorder %s2160_s15, 2  ;;  %s1728_s4 = sand.u32 1, %s2148_s12  }
 0x252   : > { %s1729_s5 = scalar_lea.sflag [#allocation3], %s1728_s4 }
 0x253   : > { %p2060_p7 = pnand %p2063_p4, %p2226_p6 }
 0x255   : > { %p2061_p8 = pneg %p2060_p7 }
 0x257   : > { %2143 = dma.done.wait (%p2061_p8), %s1729_s5, 2688  }
 0x258   : > { %2145 = vsyncadd (%p2061_p8), %s1729_s5, 4294964608  ;;  %p13_p9 = scmp.ge.s32.totalorder %s2209_s18, 4   ;;  %s2956_s12 = smov %s2152_s13 }
 0x259   : > { %s2957_s13 = smov %s2156_s14  ;;  %s2958_s14 = smov %s2220_s21 }
 0x25a   : > { %s2959_s15 = smov %s2209_s18  ;;  %15 = sbr.rel (!%p13_p9) target bundleno = 3 (0x3), region = 75 }
 0x25f   :  { %1735 = vsyncpa [#allocation3], 1 }
 0x260   :  { %1737 = vsyncpa [#allocation3 + $0x1], 1 }

</bundles_post_ra>
